<compile_context>
chip_gen: v7x
topology: tpu7x:2x2x1
jax: 0.10.0
libtpu: 0.0.40
codegen_flags: <defaults>
</compile_context>

<pallas_src>
import math

import jax
import jax.numpy as jnp
from jax.experimental import pallas as pl
from jax.experimental.pallas import tpu as pltpu

LRELU_SLOPE = 0.1
BN_EPS = 1e-5
VMEM_LIMIT = 32 * 1024 * 1024  # safe on v5e/v6e/v7x


def _lrelu(v):
    return jnp.where(v > 0, v, LRELU_SLOPE * v)


# --------------------------- fused DecoderB kernel ---------------------------

def _make_decoder_kernel(H, W, C, n_blocks):
    HW = H * W
    TAPS = [(dy, dx) for dy in (-1, 0, 1) for dx in (-1, 0, 1)]  # t = (dy+1)*3+(dx+1)

    def kernel(x_ref, hw_ref, hb_ref, *rest):
        # x_ref : (Cin, HW) input image block
        # hw_ref: (C, Cin) 1x1 conv weights (BN scale folded), hb_ref: (C, 1)
        # w*_ref: (n_blocks, C, 9*C) folded 3x3 weights, b*_ref: (n_blocks, C, 1)
        # o_ref : (C, HW) output block, doubles as the resident activation
        # xcol_ref: (9*C, HW) column-matrix scratch, h_ref: (C, HW) scratch
        if n_blocks:
            w1_ref, b1_ref, w2_ref, b2_ref, o_ref, xcol_ref, h_ref = rest
        else:
            (o_ref,) = rest

        # ---- head: 1x1 conv (BN scale folded) + bias + LeakyReLU ----------
        y0 = jnp.dot(hw_ref[...], x_ref[...], preferred_element_type=jnp.float32)
        o_ref[...] = _lrelu(y0 + hb_ref[...])

        if not n_blocks:
            return

        # ---- hoisted per-tap lane masks (row-wrap of the flat spatial) ----
        col = jax.lax.broadcasted_iota(jnp.int32, (1, HW), 1) % W
        tap_mask = {}
        for t, (dy, dx) in enumerate(TAPS):
            if dx != 0:
                off = dy * W + dx
                lo, hi = max(0, -off), HW - max(0, off)
                c = col[:, lo:hi]
                tap_mask[t] = (c + dx >= 0) & (c + dx < W)

        # ---- zero the constant out-of-image strips of xcol (tiny) ---------
        for t, (dy, dx) in enumerate(TAPS):
            off = dy * W + dx
            lo, hi = max(0, -off), HW - max(0, off)
            if lo > 0:
                xcol_ref[t * C:(t + 1) * C, 0:lo] = jnp.zeros((C, lo), jnp.float32)
            if hi < HW:
                xcol_ref[t * C:(t + 1) * C, hi:HW] = jnp.zeros((C, HW - hi),
                                                               jnp.float32)

        def fill_taps(src_ref):
            """xcol[t*C + ci, i] = src[ci, i + dy*W + dx] (zero outside image)."""
            for t, (dy, dx) in enumerate(TAPS):
                off = dy * W + dx
                lo, hi = max(0, -off), HW - max(0, off)
                v = src_ref[:, lo + off:hi + off]            # shifted in-VMEM view
                if dx != 0:
                    v = jnp.where(tap_mask[t], v, 0.0)       # mask row-wrapped lanes
                xcol_ref[t * C:(t + 1) * C, lo:hi] = v

        # ---- n_blocks fused ResB blocks; activations never leave VMEM -----
        for i in range(n_blocks):
            res = o_ref[...]                                 # residual, (C, HW)

            # conv1 (3x3, K = 9*C single matmul) + folded-BN bias + LReLU
            fill_taps(o_ref)
            h = jnp.dot(w1_ref[i], xcol_ref[...],
                        preferred_element_type=jnp.float32)
            h_ref[...] = _lrelu(h + b1_ref[i])

            # conv2 (3x3) + folded-BN bias + residual add + LReLU
            fill_taps(h_ref)
            o = jnp.dot(w2_ref[i], xcol_ref[...],
                        preferred_element_type=jnp.float32)
            o_ref[...] = _lrelu(o + b2_ref[i] + res)

    return kernel


# --------------------------- forward pass ---------------------------

def decoder_b_forward(x_nchw, params):
    """Pallas implementation of DecoderB.forward (NCHW in, NCHW out)."""
    x = x_nchw.astype(jnp.float32)
    N, Cin, H, W = x.shape
    HW = H * W
    x = x.reshape(N, Cin, HW)                     # channels-first, flat spatial

    head_w = params["head"]["w"]                  # (C, Cin), BN scale folded
    head_b = params["head"]["b"]                  # (C, 1)
    C = head_w.shape[0]
    blocks = params["blocks"]
    n_blocks = len(blocks)

    in_specs = [
        pl.BlockSpec((None, Cin, HW), lambda n: (n, 0, 0)),
        pl.BlockSpec((C, Cin), lambda n: (0, 0)),            # resident weights
        pl.BlockSpec((C, 1), lambda n: (0, 0)),
    ]
    args = [x, head_w, head_b]
    scratch = []
    if n_blocks:
        w1 = jnp.stack([b["w1"] for b in blocks])            # (n_blocks, C, 9C)
        b1 = jnp.stack([b["b1"] for b in blocks])             # (n_blocks, C, 1)
        w2 = jnp.stack([b["w2"] for b in blocks])
        b2 = jnp.stack([b["b2"] for b in blocks])
        in_specs += [
            pl.BlockSpec((n_blocks, C, 9 * C), lambda n: (0, 0, 0)),
            pl.BlockSpec((n_blocks, C, 1), lambda n: (0, 0, 0)),
            pl.BlockSpec((n_blocks, C, 9 * C), lambda n: (0, 0, 0)),
            pl.BlockSpec((n_blocks, C, 1), lambda n: (0, 0, 0)),
        ]
        args += [w1, b1, w2, b2]
        scratch = [
            pltpu.VMEM((9 * C, HW), jnp.float32),             # column matrix
            pltpu.VMEM((C, HW), jnp.float32),                 # intermediate h
        ]

    out = pl.pallas_call(
        _make_decoder_kernel(H, W, C, n_blocks),
        grid=(N,),
        in_specs=in_specs,
        out_specs=pl.BlockSpec((None, C, HW), lambda n: (n, 0, 0)),
        out_shape=jax.ShapeDtypeStruct((N, C, HW), jnp.float32),
        scratch_shapes=scratch,
        compiler_params=pltpu.CompilerParams(
            dimension_semantics=("parallel",), vmem_limit_bytes=VMEM_LIMIT),
    )(*args)

    return out.reshape(N, C, H, W)                # NCHW out (metadata reshape)


# --------------------------- parameter setup ---------------------------

def _init_bn(key, c):
    k1, k2, k3, k4 = jax.random.split(key, 4)
    gamma = 1.0 + 0.1 * jax.random.normal(k1, (c,), jnp.float32)
    beta = 0.1 * jax.random.normal(k2, (c,), jnp.float32)
    mean = 0.1 * jax.random.normal(k3, (c,), jnp.float32)
    var = jnp.abs(jax.random.normal(k4, (c,), jnp.float32)) + 0.5
    scale = gamma / jnp.sqrt(var + BN_EPS)        # eval-mode folded BN
    bias = beta - mean * scale
    return scale, bias


def init_params(key, n_blocks, cin, cout):
    """Raw params: conv weights stored tap-major (T, Cin, Cout), t = ky*3 + kx."""
    kh, kb = jax.random.split(key)
    khw, khbn = jax.random.split(kh)
    w0 = jax.random.normal(khw, (1, cin, cout), jnp.float32) / math.sqrt(cin)
    s0, b0 = _init_bn(khbn, cout)
    head = dict(w=w0, scale=s0, bias=b0)

    blocks = []
    bkeys = jax.random.split(kb, max(n_blocks, 1))
    for i in range(n_blocks):
        k1, k2, k3, k4 = jax.random.split(bkeys[i], 4)
        fan = 9 * cout
        w1 = jax.random.normal(k1, (9, cout, cout), jnp.float32) / math.sqrt(fan)
        w2 = jax.random.normal(k2, (9, cout, cout), jnp.float32) / math.sqrt(fan)
        s1, b1 = _init_bn(k3, cout)
        s2, b2 = _init_bn(k4, cout)
        blocks.append(dict(w1=w1, scale1=s1, bias1=b1,
                           w2=w2, scale2=s2, bias2=b2))
    return dict(head=head, blocks=blocks)


def fold_params(raw):
    """Fold BN scale into conv weights and lay them out as (Cout, T*Cin)."""
    def fold(w_tio, scale, bias):
        cout = w_tio.shape[2]
        wm = jnp.transpose(w_tio, (2, 0, 1)).reshape(cout, -1)   # (Cout, T*Cin)
        return wm * scale[:, None], bias[:, None]

    hw, hb = fold(raw["head"]["w"], raw["head"]["scale"], raw["head"]["bias"])
    blocks = []
    for blk in raw["blocks"]:
        w1, b1 = fold(blk["w1"], blk["scale1"], blk["bias1"])
        w2, b2 = fold(blk["w2"], blk["scale2"], blk["bias2"])
        blocks.append(dict(w1=w1, b1=b1, w2=w2, b2=b2))
    return dict(head=dict(w=hw, b=hb), blocks=blocks)


# --------------------------- plain-JAX reference ---------------------------

def _ref_forward(x_nchw, raw):
    x = jnp.transpose(x_nchw, (0, 2, 3, 1)).astype(jnp.float32)

    def conv(v, w_hwio, pad):
        return jax.lax.conv_general_dilated(
            v, w_hwio, (1, 1), pad,
            dimension_numbers=("NHWC", "HWIO", "NHWC"),
            precision=jax.lax.Precision.HIGHEST)

    head = raw["head"]
    c = head["w"].shape[2]
    w0 = head["w"].reshape(1, 1, -1, c)
    y = _lrelu(conv(x, w0, "VALID") * head["scale"] + head["bias"])
    for blk in raw["blocks"]:
        w1 = blk["w1"].reshape(3, 3, c, c)
        w2 = blk["w2"].reshape(3, 3, c, c)
        h = _lrelu(conv(y, w1, "SAME") * blk["scale1"] + blk["bias1"])
        o = conv(h, w2, "SAME") * blk["scale2"] + blk["bias2"]
        y = _lrelu(o + y)
    return jnp.transpose(y, (0, 3, 1, 2))


if __name__ == "__main__":
    key = jax.random.PRNGKey(0)
    kx, kp = jax.random.split(key)

    n_blocks, channels_in, channels_out = 2, 4, 8
    N, H, W = 2, 16, 16

    x = jax.random.normal(kx, (N, channels_in, H, W), dtype=jnp.float32)
    raw_params = init_params(kp, n_blocks, channels_in, channels_out)
    params = fold_params(raw_params)

    out = jax.block_until_ready(decoder_b_forward(x, params))
    ref = jax.block_until_ready(_ref_forward(x, raw_params))

    assert out.shape == (N, channels_out, H, W)
    assert jnp.allclose(out, ref, rtol=1e-2, atol=1e-2), "mismatch vs. JAX reference"

    print("KERNEL_OK")
</pallas_src>

<mosaic_0001>
module attributes {stable_mosaic.version = 11 : i64} {
  func.func @kernel(%arg0: i32, %arg1: memref<1x4x256xf32, #tpu.memory_space<vmem>>, %arg2: memref<8x4xf32, #tpu.memory_space<vmem>>, %arg3: memref<8x1xf32, #tpu.memory_space<vmem>>, %arg4: memref<2x8x72xf32, #tpu.memory_space<vmem>>, %arg5: memref<2x8x1xf32, #tpu.memory_space<vmem>>, %arg6: memref<2x8x72xf32, #tpu.memory_space<vmem>>, %arg7: memref<2x8x1xf32, #tpu.memory_space<vmem>>, %arg8: memref<1x8x256xf32, #tpu.memory_space<vmem>>, %arg9: memref<72x256xf32, #tpu.memory_space<vmem>>, %arg10: memref<8x256xf32, #tpu.memory_space<vmem>>) attributes {dimension_semantics = [#tpu.dimension_semantics<parallel>], iteration_bounds = array<i64: 2>, scalar_prefetch = 0 : i64, scratch_operands = 2 : i64, tpu.core_type = #tpu.core_type<tc>, window_params = [{transform_indices = @transform_0, window_bounds = array<i64: 1, 4, 256>}, {pipeline_mode = #tpu.pipeline_mode<synchronous>, transform_indices = @transform_1, window_bounds = array<i64: 8, 4>}, {pipeline_mode = #tpu.pipeline_mode<synchronous>, transform_indices = @transform_2, window_bounds = array<i64: 8, 1>}, {pipeline_mode = #tpu.pipeline_mode<synchronous>, transform_indices = @transform_3, window_bounds = array<i64: 2, 8, 72>}, {pipeline_mode = #tpu.pipeline_mode<synchronous>, transform_indices = @transform_4, window_bounds = array<i64: 2, 8, 1>}, {pipeline_mode = #tpu.pipeline_mode<synchronous>, transform_indices = @transform_5, window_bounds = array<i64: 2, 8, 72>}, {pipeline_mode = #tpu.pipeline_mode<synchronous>, transform_indices = @transform_6, window_bounds = array<i64: 2, 8, 1>}, {transform_indices = @transform_7, window_bounds = array<i64: 1, 8, 256>}]} {
    %c0 = arith.constant 0 : index
    %c0_0 = arith.constant 0 : index
    %0 = vector.load %arg2[%c0, %c0_0] : memref<8x4xf32, #tpu.memory_space<vmem>>, vector<8x4xf32>
    %c0_1 = arith.constant 0 : index
    %c0_2 = arith.constant 0 : index
    %c0_3 = arith.constant 0 : index
    %1 = vector.load %arg1[%c0_1, %c0_2, %c0_3] : memref<1x4x256xf32, #tpu.memory_space<vmem>>, vector<1x4x256xf32>
    %2 = vector.shape_cast %1 : vector<1x4x256xf32> to vector<4x256xf32>
    %cst = arith.constant dense<0.000000e+00> : vector<8x256xf32>
    %3 = tpu.matmul %0, %2, %cst {dimension_numbers = #tpu.dot_dimension_numbers<[1], [0], [0], [1], [0, 0, 1, 1], [], []>} : vector<8x4xf32>, vector<4x256xf32>, vector<8x256xf32> -> vector<8x256xf32>
    %c0_4 = arith.constant 0 : index
    %c0_5 = arith.constant 0 : index
    %4 = vector.load %arg3[%c0_4, %c0_5] : memref<8x1xf32, #tpu.memory_space<vmem>>, vector<8x1xf32>
    %5 = vector.broadcast %4 : vector<8x1xf32> to vector<8x256xf32>
    %6 = arith.addf %3, %5 : vector<8x256xf32>
    %cst_6 = arith.constant 0.000000e+00 : f32
    %7 = vector.broadcast %cst_6 : f32 to vector<8x256xf32>
    %8 = arith.cmpf ogt, %6, %7 : vector<8x256xf32>
    %cst_7 = arith.constant 1.000000e-01 : f32
    %9 = vector.broadcast %cst_7 : f32 to vector<8x256xf32>
    %10 = arith.mulf %9, %6 : vector<8x256xf32>
    %11 = arith.select %8, %6, %10 : vector<8x256xi1>, vector<8x256xf32>
    %c0_8 = arith.constant 0 : index
    %c0_9 = arith.constant 0 : index
    %c0_10 = arith.constant 0 : index
    %12 = vector.load %arg8[%c0_8, %c0_9, %c0_10] : memref<1x8x256xf32, #tpu.memory_space<vmem>>, vector<1x8x256xf32>
    %13 = vector.shape_cast %12 : vector<1x8x256xf32> to vector<8x256xf32>
    %14 = vector.shape_cast %11 : vector<8x256xf32> to vector<1x8x256xf32>
    tpu.vector_store %arg8[%c0_8, %c0_9, %c0_10], %14 {strides = array<i32>} : memref<1x8x256xf32, #tpu.memory_space<vmem>>, vector<1x8x256xf32>,
    %15 = tpu.iota {dimensions = array<i32: 1>} : vector<1x256xi32>
    %c16_i32 = arith.constant 16 : i32
    %c0_i32 = arith.constant 0 : i32
    %16 = arith.cmpi eq, %c16_i32, %c0_i32 : i32
    %c1_i32 = arith.constant 1 : i32
    %17 = arith.select %16, %c1_i32, %c16_i32 : i32
    %18 = vector.broadcast %17 : i32 to vector<1x256xi32>
    %19 = arith.remsi %15, %18 : vector<1x256xi32>
    %c0_i32_11 = arith.constant 0 : i32
    %20 = vector.broadcast %c0_i32_11 : i32 to vector<1x256xi32>
    %21 = arith.cmpi ne, %19, %20 : vector<1x256xi32>
    %c0_i32_12 = arith.constant 0 : i32
    %22 = vector.broadcast %c0_i32_12 : i32 to vector<1x256xi32>
    %23 = arith.cmpi slt, %19, %22 : vector<1x256xi32>
    %c0_i32_13 = arith.constant 0 : i32
    %24 = arith.cmpi slt, %17, %c0_i32_13 : i32
    %25 = vector.broadcast %24 : i1 to vector<1x256xi1>
    %26 = vector.broadcast %25 : vector<1x256xi1> to vector<1x256xi1>
    %27 = arith.xori %23, %26 : vector<1x256xi1>
    %28 = arith.andi %27, %21 : vector<1x256xi1>
    %29 = vector.broadcast %17 : i32 to vector<1x256xi32>
    %30 = arith.addi %19, %29 : vector<1x256xi32>
    %31 = arith.select %28, %30, %19 : vector<1x256xi1>, vector<1x256xi32>
    %32 = vector.extract_strided_slice %31 {offsets = [0, 17], sizes = [1, 239], strides = [1, 1]} : vector<1x256xi32> to vector<1x239xi32>
    %c-1_i32 = arith.constant -1 : i32
    %33 = vector.broadcast %c-1_i32 : i32 to vector<1x239xi32>
    %34 = arith.addi %32, %33 : vector<1x239xi32>
    %c0_i32_14 = arith.constant 0 : i32
    %35 = vector.broadcast %c0_i32_14 : i32 to vector<1x239xi32>
    %36 = arith.cmpi sge, %34, %35 : vector<1x239xi32>
    %c-1_i32_15 = arith.constant -1 : i32
    %37 = vector.broadcast %c-1_i32_15 : i32 to vector<1x239xi32>
    %38 = arith.addi %32, %37 : vector<1x239xi32>
    %c16_i32_16 = arith.constant 16 : i32
    %39 = vector.broadcast %c16_i32_16 : i32 to vector<1x239xi32>
    %40 = arith.cmpi slt, %38, %39 : vector<1x239xi32>
    %41 = arith.andi %36, %40 : vector<1x239xi1>
    %42 = vector.extract_strided_slice %31 {offsets = [0, 15], sizes = [1, 241], strides = [1, 1]} : vector<1x256xi32> to vector<1x241xi32>
    %c1_i32_17 = arith.constant 1 : i32
    %43 = vector.broadcast %c1_i32_17 : i32 to vector<1x241xi32>
    %44 = arith.addi %42, %43 : vector<1x241xi32>
    %c0_i32_18 = arith.constant 0 : i32
    %45 = vector.broadcast %c0_i32_18 : i32 to vector<1x241xi32>
    %46 = arith.cmpi sge, %44, %45 : vector<1x241xi32>
    %c1_i32_19 = arith.constant 1 : i32
    %47 = vector.broadcast %c1_i32_19 : i32 to vector<1x241xi32>
    %48 = arith.addi %42, %47 : vector<1x241xi32>
    %c16_i32_20 = arith.constant 16 : i32
    %49 = vector.broadcast %c16_i32_20 : i32 to vector<1x241xi32>
    %50 = arith.cmpi slt, %48, %49 : vector<1x241xi32>
    %51 = arith.andi %46, %50 : vector<1x241xi1>
    %52 = vector.extract_strided_slice %31 {offsets = [0, 1], sizes = [1, 255], strides = [1, 1]} : vector<1x256xi32> to vector<1x255xi32>
    %c-1_i32_21 = arith.constant -1 : i32
    %53 = vector.broadcast %c-1_i32_21 : i32 to vector<1x255xi32>
    %54 = arith.addi %52, %53 : vector<1x255xi32>
    %c0_i32_22 = arith.constant 0 : i32
    %55 = vector.broadcast %c0_i32_22 : i32 to vector<1x255xi32>
    %56 = arith.cmpi sge, %54, %55 : vector<1x255xi32>
    %c-1_i32_23 = arith.constant -1 : i32
    %57 = vector.broadcast %c-1_i32_23 : i32 to vector<1x255xi32>
    %58 = arith.addi %52, %57 : vector<1x255xi32>
    %c16_i32_24 = arith.constant 16 : i32
    %59 = vector.broadcast %c16_i32_24 : i32 to vector<1x255xi32>
    %60 = arith.cmpi slt, %58, %59 : vector<1x255xi32>
    %61 = arith.andi %56, %60 : vector<1x255xi1>
    %62 = vector.extract_strided_slice %31 {offsets = [0, 0], sizes = [1, 255], strides = [1, 1]} : vector<1x256xi32> to vector<1x255xi32>
    %c1_i32_25 = arith.constant 1 : i32
    %63 = vector.broadcast %c1_i32_25 : i32 to vector<1x255xi32>
    %64 = arith.addi %62, %63 : vector<1x255xi32>
    %c0_i32_26 = arith.constant 0 : i32
    %65 = vector.broadcast %c0_i32_26 : i32 to vector<1x255xi32>
    %66 = arith.cmpi sge, %64, %65 : vector<1x255xi32>
    %c1_i32_27 = arith.constant 1 : i32
    %67 = vector.broadcast %c1_i32_27 : i32 to vector<1x255xi32>
    %68 = arith.addi %62, %67 : vector<1x255xi32>
    %c16_i32_28 = arith.constant 16 : i32
    %69 = vector.broadcast %c16_i32_28 : i32 to vector<1x255xi32>
    %70 = arith.cmpi slt, %68, %69 : vector<1x255xi32>
    %71 = arith.andi %66, %70 : vector<1x255xi1>
    %72 = vector.extract_strided_slice %31 {offsets = [0, 0], sizes = [1, 241], strides = [1, 1]} : vector<1x256xi32> to vector<1x241xi32>
    %c-1_i32_29 = arith.constant -1 : i32
    %73 = vector.broadcast %c-1_i32_29 : i32 to vector<1x241xi32>
    %74 = arith.addi %72, %73 : vector<1x241xi32>
    %c0_i32_30 = arith.constant 0 : i32
    %75 = vector.broadcast %c0_i32_30 : i32 to vector<1x241xi32>
    %76 = arith.cmpi sge, %74, %75 : vector<1x241xi32>
    %c-1_i32_31 = arith.constant -1 : i32
    %77 = vector.broadcast %c-1_i32_31 : i32 to vector<1x241xi32>
    %78 = arith.addi %72, %77 : vector<1x241xi32>
    %c16_i32_32 = arith.constant 16 : i32
    %79 = vector.broadcast %c16_i32_32 : i32 to vector<1x241xi32>
    %80 = arith.cmpi slt, %78, %79 : vector<1x241xi32>
    %81 = arith.andi %76, %80 : vector<1x241xi1>
    %82 = vector.extract_strided_slice %31 {offsets = [0, 0], sizes = [1, 239], strides = [1, 1]} : vector<1x256xi32> to vector<1x239xi32>
    %c1_i32_33 = arith.constant 1 : i32
    %83 = vector.broadcast %c1_i32_33 : i32 to vector<1x239xi32>
    %84 = arith.addi %82, %83 : vector<1x239xi32>
    %c0_i32_34 = arith.constant 0 : i32
    %85 = vector.broadcast %c0_i32_34 : i32 to vector<1x239xi32>
    %86 = arith.cmpi sge, %84, %85 : vector<1x239xi32>
    %c1_i32_35 = arith.constant 1 : i32
    %87 = vector.broadcast %c1_i32_35 : i32 to vector<1x239xi32>
    %88 = arith.addi %82, %87 : vector<1x239xi32>
    %c16_i32_36 = arith.constant 16 : i32
    %89 = vector.broadcast %c16_i32_36 : i32 to vector<1x239xi32>
    %90 = arith.cmpi slt, %88, %89 : vector<1x239xi32>
    %91 = arith.andi %86, %90 : vector<1x239xi1>
    %cst_37 = arith.constant 0.000000e+00 : f32
    %92 = vector.broadcast %cst_37 : f32 to vector<8x17xf32>
    %c0_38 = arith.constant 0 : index
    %c0_39 = arith.constant 0 : index
    %93 = vector.load %arg9[%c0_38, %c0_39] : memref<72x256xf32, #tpu.memory_space<vmem>>, vector<8x17xf32>
    tpu.vector_store %arg9[%c0_38, %c0_39], %92 {strides = array<i32>} : memref<72x256xf32, #tpu.memory_space<vmem>>, vector<8x17xf32>,
    %cst_40 = arith.constant 0.000000e+00 : f32
    %94 = vector.broadcast %cst_40 : f32 to vector<8x16xf32>
    %c8 = arith.constant 8 : index
    %c0_41 = arith.constant 0 : index
    %95 = vector.load %arg9[%c8, %c0_41] : memref<72x256xf32, #tpu.memory_space<vmem>>, vector<8x16xf32>
    tpu.vector_store %arg9[%c8, %c0_41], %94 {strides = array<i32>} : memref<72x256xf32, #tpu.memory_space<vmem>>, vector<8x16xf32>,
    %cst_42 = arith.constant 0.000000e+00 : f32
    %96 = vector.broadcast %cst_42 : f32 to vector<8x15xf32>
    %c16 = arith.constant 16 : index
    %c0_43 = arith.constant 0 : index
    %97 = vector.load %arg9[%c16, %c0_43] : memref<72x256xf32, #tpu.memory_space<vmem>>, vector<8x15xf32>
    tpu.vector_store %arg9[%c16, %c0_43], %96 {strides = array<i32>} : memref<72x256xf32, #tpu.memory_space<vmem>>, vector<8x15xf32>,
    %cst_44 = arith.constant 0.000000e+00 : f32
    %98 = vector.broadcast %cst_44 : f32 to vector<8x1xf32>
    %c24 = arith.constant 24 : index
    %c0_45 = arith.constant 0 : index
    %99 = vector.load %arg9[%c24, %c0_45] : memref<72x256xf32, #tpu.memory_space<vmem>>, vector<8x1xf32>
    tpu.vector_store %arg9[%c24, %c0_45], %98 {strides = array<i32>} : memref<72x256xf32, #tpu.memory_space<vmem>>, vector<8x1xf32>,
    %cst_46 = arith.constant 0.000000e+00 : f32
    %100 = vector.broadcast %cst_46 : f32 to vector<8x1xf32>
    %c40 = arith.constant 40 : index
    %c255 = arith.constant 255 : index
    %101 = vector.load %arg9[%c40, %c255] : memref<72x256xf32, #tpu.memory_space<vmem>>, vector<8x1xf32>
    tpu.vector_store %arg9[%c40, %c255], %100 {strides = array<i32>} : memref<72x256xf32, #tpu.memory_space<vmem>>, vector<8x1xf32>,
    %cst_47 = arith.constant 0.000000e+00 : f32
    %102 = vector.broadcast %cst_47 : f32 to vector<8x15xf32>
    %c48 = arith.constant 48 : index
    %c241 = arith.constant 241 : index
    %103 = vector.load %arg9[%c48, %c241] : memref<72x256xf32, #tpu.memory_space<vmem>>, vector<8x15xf32>
    tpu.vector_store %arg9[%c48, %c241], %102 {strides = array<i32>} : memref<72x256xf32, #tpu.memory_space<vmem>>, vector<8x15xf32>,
    %cst_48 = arith.constant 0.000000e+00 : f32
    %104 = vector.broadcast %cst_48 : f32 to vector<8x16xf32>
    %c56 = arith.constant 56 : index
    %c240 = arith.constant 240 : index
    %105 = vector.load %arg9[%c56, %c240] : memref<72x256xf32, #tpu.memory_space<vmem>>, vector<8x16xf32>
    tpu.vector_store %arg9[%c56, %c240], %104 {strides = array<i32>} : memref<72x256xf32, #tpu.memory_space<vmem>>, vector<8x16xf32>,
    %cst_49 = arith.constant 0.000000e+00 : f32
    %106 = vector.broadcast %cst_49 : f32 to vector<8x17xf32>
    %c64 = arith.constant 64 : index
    %c239 = arith.constant 239 : index
    %107 = vector.load %arg9[%c64, %c239] : memref<72x256xf32, #tpu.memory_space<vmem>>, vector<8x17xf32>
    tpu.vector_store %arg9[%c64, %c239], %106 {strides = array<i32>} : memref<72x256xf32, #tpu.memory_space<vmem>>, vector<8x17xf32>,
    %c0_50 = arith.constant 0 : index
    %c0_51 = arith.constant 0 : index
    %c0_52 = arith.constant 0 : index
    %108 = vector.load %arg8[%c0_50, %c0_51, %c0_52] : memref<1x8x256xf32, #tpu.memory_space<vmem>>, vector<1x8x256xf32>
    %109 = vector.shape_cast %108 : vector<1x8x256xf32> to vector<8x256xf32>
    %c0_53 = arith.constant 0 : index
    %c0_54 = arith.constant 0 : index
    %c0_55 = arith.constant 0 : index
    %110 = vector.load %arg8[%c0_53, %c0_54, %c0_55] : memref<1x8x256xf32, #tpu.memory_space<vmem>>, vector<1x8x239xf32>
    %111 = vector.shape_cast %110 : vector<1x8x239xf32> to vector<8x239xf32>
    %cst_56 = arith.constant 0.000000e+00 : f32
    %112 = vector.shape_cast %41 : vector<1x239xi1> to vector<1x239xi1>
    %113 = vector.broadcast %112 : vector<1x239xi1> to vector<8x239xi1>
    %114 = vector.broadcast %cst_56 : f32 to vector<8x239xf32>
    %115 = arith.select %113, %111, %114 : vector<8x239xi1>, vector<8x239xf32>
    %c0_57 = arith.constant 0 : index
    %c17 = arith.constant 17 : index
    %116 = vector.load %arg9[%c0_57, %c17] : memref<72x256xf32, #tpu.memory_space<vmem>>, vector<8x239xf32>
    tpu.vector_store %arg9[%c0_57, %c17], %115 {strides = array<i32>} : memref<72x256xf32, #tpu.memory_space<vmem>>, vector<8x239xf32>,
    %c0_58 = arith.constant 0 : index
    %c0_59 = arith.constant 0 : index
    %c0_60 = arith.constant 0 : index
    %117 = vector.load %arg8[%c0_58, %c0_59, %c0_60] : memref<1x8x256xf32, #tpu.memory_space<vmem>>, vector<1x8x240xf32>
    %118 = vector.shape_cast %117 : vector<1x8x240xf32> to vector<8x240xf32>
    %c8_61 = arith.constant 8 : index
    %c16_62 = arith.constant 16 : index
    %119 = vector.load %arg9[%c8_61, %c16_62] : memref<72x256xf32, #tpu.memory_space<vmem>>, vector<8x240xf32>
    tpu.vector_store %arg9[%c8_61, %c16_62], %118 {strides = array<i32>} : memref<72x256xf32, #tpu.memory_space<vmem>>, vector<8x240xf32>,
    %c0_63 = arith.constant 0 : index
    %c0_64 = arith.constant 0 : index
    %c0_65 = arith.constant 0 : index
    %120 = vector.load %arg8[%c0_63, %c0_64, %c0_65] : memref<1x8x256xf32, #tpu.memory_space<vmem>>, vector<1x8x241xf32>
    %121 = vector.shape_cast %120 : vector<1x8x241xf32> to vector<8x241xf32>
    %cst_66 = arith.constant 0.000000e+00 : f32
    %122 = vector.shape_cast %51 : vector<1x241xi1> to vector<1x241xi1>
    %123 = vector.broadcast %122 : vector<1x241xi1> to vector<8x241xi1>
    %124 = vector.broadcast %cst_66 : f32 to vector<8x241xf32>
    %125 = arith.select %123, %121, %124 : vector<8x241xi1>, vector<8x241xf32>
    %c16_67 = arith.constant 16 : index
    %c15 = arith.constant 15 : index
    %126 = vector.load %arg9[%c16_67, %c15] : memref<72x256xf32, #tpu.memory_space<vmem>>, vector<8x241xf32>
    tpu.vector_store %arg9[%c16_67, %c15], %125 {strides = array<i32>} : memref<72x256xf32, #tpu.memory_space<vmem>>, vector<8x241xf32>,
    %c0_68 = arith.constant 0 : index
    %c0_69 = arith.constant 0 : index
    %c0_70 = arith.constant 0 : index
    %127 = vector.load %arg8[%c0_68, %c0_69, %c0_70] : memref<1x8x256xf32, #tpu.memory_space<vmem>>, vector<1x8x255xf32>
    %128 = vector.shape_cast %127 : vector<1x8x255xf32> to vector<8x255xf32>
    %cst_71 = arith.constant 0.000000e+00 : f32
    %129 = vector.shape_cast %61 : vector<1x255xi1> to vector<1x255xi1>
    %130 = vector.broadcast %129 : vector<1x255xi1> to vector<8x255xi1>
    %131 = vector.broadcast %cst_71 : f32 to vector<8x255xf32>
    %132 = arith.select %130, %128, %131 : vector<8x255xi1>, vector<8x255xf32>
    %c24_72 = arith.constant 24 : index
    %c1 = arith.constant 1 : index
    %133 = vector.load %arg9[%c24_72, %c1] : memref<72x256xf32, #tpu.memory_space<vmem>>, vector<8x255xf32>
    tpu.vector_store %arg9[%c24_72, %c1], %132 {strides = array<i32>} : memref<72x256xf32, #tpu.memory_space<vmem>>, vector<8x255xf32>,
    %c0_73 = arith.constant 0 : index
    %c0_74 = arith.constant 0 : index
    %c0_75 = arith.constant 0 : index
    %134 = vector.load %arg8[%c0_73, %c0_74, %c0_75] : memref<1x8x256xf32, #tpu.memory_space<vmem>>, vector<1x8x256xf32>
    %135 = vector.shape_cast %134 : vector<1x8x256xf32> to vector<8x256xf32>
    %c32 = arith.constant 32 : index
    %c0_76 = arith.constant 0 : index
    %136 = vector.load %arg9[%c32, %c0_76] : memref<72x256xf32, #tpu.memory_space<vmem>>, vector<8x256xf32>
    tpu.vector_store %arg9[%c32, %c0_76], %135 {strides = array<i32>} : memref<72x256xf32, #tpu.memory_space<vmem>>, vector<8x256xf32>,
    %c0_77 = arith.constant 0 : index
    %c0_78 = arith.constant 0 : index
    %c1_79 = arith.constant 1 : index
    %137 = vector.load %arg8[%c0_77, %c0_78, %c1_79] : memref<1x8x256xf32, #tpu.memory_space<vmem>>, vector<1x8x255xf32>
    %138 = vector.shape_cast %137 : vector<1x8x255xf32> to vector<8x255xf32>
    %cst_80 = arith.constant 0.000000e+00 : f32
    %139 = vector.shape_cast %71 : vector<1x255xi1> to vector<1x255xi1>
    %140 = vector.broadcast %139 : vector<1x255xi1> to vector<8x255xi1>
    %141 = vector.broadcast %cst_80 : f32 to vector<8x255xf32>
    %142 = arith.select %140, %138, %141 : vector<8x255xi1>, vector<8x255xf32>
    %c40_81 = arith.constant 40 : index
    %c0_82 = arith.constant 0 : index
    %143 = vector.load %arg9[%c40_81, %c0_82] : memref<72x256xf32, #tpu.memory_space<vmem>>, vector<8x255xf32>
    tpu.vector_store %arg9[%c40_81, %c0_82], %142 {strides = array<i32>} : memref<72x256xf32, #tpu.memory_space<vmem>>, vector<8x255xf32>,
    %c0_83 = arith.constant 0 : index
    %c0_84 = arith.constant 0 : index
    %c15_85 = arith.constant 15 : index
    %144 = vector.load %arg8[%c0_83, %c0_84, %c15_85] : memref<1x8x256xf32, #tpu.memory_space<vmem>>, vector<1x8x241xf32>
    %145 = vector.shape_cast %144 : vector<1x8x241xf32> to vector<8x241xf32>
    %cst_86 = arith.constant 0.000000e+00 : f32
    %146 = vector.shape_cast %81 : vector<1x241xi1> to vector<1x241xi1>
    %147 = vector.broadcast %146 : vector<1x241xi1> to vector<8x241xi1>
    %148 = vector.broadcast %cst_86 : f32 to vector<8x241xf32>
    %149 = arith.select %147, %145, %148 : vector<8x241xi1>, vector<8x241xf32>
    %c48_87 = arith.constant 48 : index
    %c0_88 = arith.constant 0 : index
    %150 = vector.load %arg9[%c48_87, %c0_88] : memref<72x256xf32, #tpu.memory_space<vmem>>, vector<8x241xf32>
    tpu.vector_store %arg9[%c48_87, %c0_88], %149 {strides = array<i32>} : memref<72x256xf32, #tpu.memory_space<vmem>>, vector<8x241xf32>,
    %c0_89 = arith.constant 0 : index
    %c0_90 = arith.constant 0 : index
    %c16_91 = arith.constant 16 : index
    %151 = vector.load %arg8[%c0_89, %c0_90, %c16_91] : memref<1x8x256xf32, #tpu.memory_space<vmem>>, vector<1x8x240xf32>
    %152 = vector.shape_cast %151 : vector<1x8x240xf32> to vector<8x240xf32>
    %c56_92 = arith.constant 56 : index
    %c0_93 = arith.constant 0 : index
    %153 = vector.load %arg9[%c56_92, %c0_93] : memref<72x256xf32, #tpu.memory_space<vmem>>, vector<8x240xf32>
    tpu.vector_store %arg9[%c56_92, %c0_93], %152 {strides = array<i32>} : memref<72x256xf32, #tpu.memory_space<vmem>>, vector<8x240xf32>,
    %c0_94 = arith.constant 0 : index
    %c0_95 = arith.constant 0 : index
    %c17_96 = arith.constant 17 : index
    %154 = vector.load %arg8[%c0_94, %c0_95, %c17_96] : memref<1x8x256xf32, #tpu.memory_space<vmem>>, vector<1x8x239xf32>
    %155 = vector.shape_cast %154 : vector<1x8x239xf32> to vector<8x239xf32>
    %cst_97 = arith.constant 0.000000e+00 : f32
    %156 = vector.shape_cast %91 : vector<1x239xi1> to vector<1x239xi1>
    %157 = vector.broadcast %156 : vector<1x239xi1> to vector<8x239xi1>
    %158 = vector.broadcast %cst_97 : f32 to vector<8x239xf32>
    %159 = arith.select %157, %155, %158 : vector<8x239xi1>, vector<8x239xf32>
    %c64_98 = arith.constant 64 : index
    %c0_99 = arith.constant 0 : index
    %160 = vector.load %arg9[%c64_98, %c0_99] : memref<72x256xf32, #tpu.memory_space<vmem>>, vector<8x239xf32>
    tpu.vector_store %arg9[%c64_98, %c0_99], %159 {strides = array<i32>} : memref<72x256xf32, #tpu.memory_space<vmem>>, vector<8x239xf32>,
    %c0_100 = arith.constant 0 : index
    %c0_101 = arith.constant 0 : index
    %c0_102 = arith.constant 0 : index
    %161 = vector.load %arg4[%c0_100, %c0_101, %c0_102] : memref<2x8x72xf32, #tpu.memory_space<vmem>>, vector<1x8x72xf32>
    %162 = vector.shape_cast %161 : vector<1x8x72xf32> to vector<8x72xf32>
    %c0_103 = arith.constant 0 : index
    %c0_104 = arith.constant 0 : index
    %163 = vector.load %arg9[%c0_103, %c0_104] : memref<72x256xf32, #tpu.memory_space<vmem>>, vector<72x256xf32>
    %cst_105 = arith.constant dense<0.000000e+00> : vector<8x256xf32>
    %164 = tpu.matmul %162, %163, %cst_105 {dimension_numbers = #tpu.dot_dimension_numbers<[1], [0], [0], [1], [0, 0, 1, 1], [], []>} : vector<8x72xf32>, vector<72x256xf32>, vector<8x256xf32> -> vector<8x256xf32>
    %c0_106 = arith.constant 0 : index
    %c0_107 = arith.constant 0 : index
    %c0_108 = arith.constant 0 : index
    %165 = vector.load %arg5[%c0_106, %c0_107, %c0_108] : memref<2x8x1xf32, #tpu.memory_space<vmem>>, vector<1x8x1xf32>
    %166 = vector.shape_cast %165 : vector<1x8x1xf32> to vector<8x1xf32>
    %167 = vector.broadcast %166 : vector<8x1xf32> to vector<8x256xf32>
    %168 = arith.addf %164, %167 : vector<8x256xf32>
    %cst_109 = arith.constant 0.000000e+00 : f32
    %169 = vector.broadcast %cst_109 : f32 to vector<8x256xf32>
    %170 = arith.cmpf ogt, %168, %169 : vector<8x256xf32>
    %cst_110 = arith.constant 1.000000e-01 : f32
    %171 = vector.broadcast %cst_110 : f32 to vector<8x256xf32>
    %172 = arith.mulf %171, %168 : vector<8x256xf32>
    %173 = arith.select %170, %168, %172 : vector<8x256xi1>, vector<8x256xf32>
    %c0_111 = arith.constant 0 : index
    %c0_112 = arith.constant 0 : index
    %174 = vector.load %arg10[%c0_111, %c0_112] : memref<8x256xf32, #tpu.memory_space<vmem>>, vector<8x256xf32>
    tpu.vector_store %arg10[%c0_111, %c0_112], %173 {strides = array<i32>} : memref<8x256xf32, #tpu.memory_space<vmem>>, vector<8x256xf32>,
    %c0_113 = arith.constant 0 : index
    %c0_114 = arith.constant 0 : index
    %175 = vector.load %arg10[%c0_113, %c0_114] : memref<8x256xf32, #tpu.memory_space<vmem>>, vector<8x239xf32>
    %cst_115 = arith.constant 0.000000e+00 : f32
    %176 = vector.shape_cast %41 : vector<1x239xi1> to vector<1x239xi1>
    %177 = vector.broadcast %176 : vector<1x239xi1> to vector<8x239xi1>
    %178 = vector.broadcast %cst_115 : f32 to vector<8x239xf32>
    %179 = arith.select %177, %175, %178 : vector<8x239xi1>, vector<8x239xf32>
    %c0_116 = arith.constant 0 : index
    %c17_117 = arith.constant 17 : index
    %180 = vector.load %arg9[%c0_116, %c17_117] : memref<72x256xf32, #tpu.memory_space<vmem>>, vector<8x239xf32>
    tpu.vector_store %arg9[%c0_116, %c17_117], %179 {strides = array<i32>} : memref<72x256xf32, #tpu.memory_space<vmem>>, vector<8x239xf32>,
    %c0_118 = arith.constant 0 : index
    %c0_119 = arith.constant 0 : index
    %181 = vector.load %arg10[%c0_118, %c0_119] : memref<8x256xf32, #tpu.memory_space<vmem>>, vector<8x240xf32>
    %c8_120 = arith.constant 8 : index
    %c16_121 = arith.constant 16 : index
    %182 = vector.load %arg9[%c8_120, %c16_121] : memref<72x256xf32, #tpu.memory_space<vmem>>, vector<8x240xf32>
    tpu.vector_store %arg9[%c8_120, %c16_121], %181 {strides = array<i32>} : memref<72x256xf32, #tpu.memory_space<vmem>>, vector<8x240xf32>,
    %c0_122 = arith.constant 0 : index
    %c0_123 = arith.constant 0 : index
    %183 = vector.load %arg10[%c0_122, %c0_123] : memref<8x256xf32, #tpu.memory_space<vmem>>, vector<8x241xf32>
    %cst_124 = arith.constant 0.000000e+00 : f32
    %184 = vector.shape_cast %51 : vector<1x241xi1> to vector<1x241xi1>
    %185 = vector.broadcast %184 : vector<1x241xi1> to vector<8x241xi1>
    %186 = vector.broadcast %cst_124 : f32 to vector<8x241xf32>
    %187 = arith.select %185, %183, %186 : vector<8x241xi1>, vector<8x241xf32>
    %c16_125 = arith.constant 16 : index
    %c15_126 = arith.constant 15 : index
    %188 = vector.load %arg9[%c16_125, %c15_126] : memref<72x256xf32, #tpu.memory_space<vmem>>, vector<8x241xf32>
    tpu.vector_store %arg9[%c16_125, %c15_126], %187 {strides = array<i32>} : memref<72x256xf32, #tpu.memory_space<vmem>>, vector<8x241xf32>,
    %c0_127 = arith.constant 0 : index
    %c0_128 = arith.constant 0 : index
    %189 = vector.load %arg10[%c0_127, %c0_128] : memref<8x256xf32, #tpu.memory_space<vmem>>, vector<8x255xf32>
    %cst_129 = arith.constant 0.000000e+00 : f32
    %190 = vector.shape_cast %61 : vector<1x255xi1> to vector<1x255xi1>
    %191 = vector.broadcast %190 : vector<1x255xi1> to vector<8x255xi1>
    %192 = vector.broadcast %cst_129 : f32 to vector<8x255xf32>
    %193 = arith.select %191, %189, %192 : vector<8x255xi1>, vector<8x255xf32>
    %c24_130 = arith.constant 24 : index
    %c1_131 = arith.constant 1 : index
    %194 = vector.load %arg9[%c24_130, %c1_131] : memref<72x256xf32, #tpu.memory_space<vmem>>, vector<8x255xf32>
    tpu.vector_store %arg9[%c24_130, %c1_131], %193 {strides = array<i32>} : memref<72x256xf32, #tpu.memory_space<vmem>>, vector<8x255xf32>,
    %c0_132 = arith.constant 0 : index
    %c0_133 = arith.constant 0 : index
    %195 = vector.load %arg10[%c0_132, %c0_133] : memref<8x256xf32, #tpu.memory_space<vmem>>, vector<8x256xf32>
    %c32_134 = arith.constant 32 : index
    %c0_135 = arith.constant 0 : index
    %196 = vector.load %arg9[%c32_134, %c0_135] : memref<72x256xf32, #tpu.memory_space<vmem>>, vector<8x256xf32>
    tpu.vector_store %arg9[%c32_134, %c0_135], %195 {strides = array<i32>} : memref<72x256xf32, #tpu.memory_space<vmem>>, vector<8x256xf32>,
    %c0_136 = arith.constant 0 : index
    %c1_137 = arith.constant 1 : index
    %197 = vector.load %arg10[%c0_136, %c1_137] : memref<8x256xf32, #tpu.memory_space<vmem>>, vector<8x255xf32>
    %cst_138 = arith.constant 0.000000e+00 : f32
    %198 = vector.shape_cast %71 : vector<1x255xi1> to vector<1x255xi1>
    %199 = vector.broadcast %198 : vector<1x255xi1> to vector<8x255xi1>
    %200 = vector.broadcast %cst_138 : f32 to vector<8x255xf32>
    %201 = arith.select %199, %197, %200 : vector<8x255xi1>, vector<8x255xf32>
    %c40_139 = arith.constant 40 : index
    %c0_140 = arith.constant 0 : index
    %202 = vector.load %arg9[%c40_139, %c0_140] : memref<72x256xf32, #tpu.memory_space<vmem>>, vector<8x255xf32>
    tpu.vector_store %arg9[%c40_139, %c0_140], %201 {strides = array<i32>} : memref<72x256xf32, #tpu.memory_space<vmem>>, vector<8x255xf32>,
    %c0_141 = arith.constant 0 : index
    %c15_142 = arith.constant 15 : index
    %203 = vector.load %arg10[%c0_141, %c15_142] : memref<8x256xf32, #tpu.memory_space<vmem>>, vector<8x241xf32>
    %cst_143 = arith.constant 0.000000e+00 : f32
    %204 = vector.shape_cast %81 : vector<1x241xi1> to vector<1x241xi1>
    %205 = vector.broadcast %204 : vector<1x241xi1> to vector<8x241xi1>
    %206 = vector.broadcast %cst_143 : f32 to vector<8x241xf32>
    %207 = arith.select %205, %203, %206 : vector<8x241xi1>, vector<8x241xf32>
    %c48_144 = arith.constant 48 : index
    %c0_145 = arith.constant 0 : index
    %208 = vector.load %arg9[%c48_144, %c0_145] : memref<72x256xf32, #tpu.memory_space<vmem>>, vector<8x241xf32>
    tpu.vector_store %arg9[%c48_144, %c0_145], %207 {strides = array<i32>} : memref<72x256xf32, #tpu.memory_space<vmem>>, vector<8x241xf32>,
    %c0_146 = arith.constant 0 : index
    %c16_147 = arith.constant 16 : index
    %209 = vector.load %arg10[%c0_146, %c16_147] : memref<8x256xf32, #tpu.memory_space<vmem>>, vector<8x240xf32>
    %c56_148 = arith.constant 56 : index
    %c0_149 = arith.constant 0 : index
    %210 = vector.load %arg9[%c56_148, %c0_149] : memref<72x256xf32, #tpu.memory_space<vmem>>, vector<8x240xf32>
    tpu.vector_store %arg9[%c56_148, %c0_149], %209 {strides = array<i32>} : memref<72x256xf32, #tpu.memory_space<vmem>>, vector<8x240xf32>,
    %c0_150 = arith.constant 0 : index
    %c17_151 = arith.constant 17 : index
    %211 = vector.load %arg10[%c0_150, %c17_151] : memref<8x256xf32, #tpu.memory_space<vmem>>, vector<8x239xf32>
    %cst_152 = arith.constant 0.000000e+00 : f32
    %212 = vector.shape_cast %91 : vector<1x239xi1> to vector<1x239xi1>
    %213 = vector.broadcast %212 : vector<1x239xi1> to vector<8x239xi1>
    %214 = vector.broadcast %cst_152 : f32 to vector<8x239xf32>
    %215 = arith.select %213, %211, %214 : vector<8x239xi1>, vector<8x239xf32>
    %c64_153 = arith.constant 64 : index
    %c0_154 = arith.constant 0 : index
    %216 = vector.load %arg9[%c64_153, %c0_154] : memref<72x256xf32, #tpu.memory_space<vmem>>, vector<8x239xf32>
    tpu.vector_store %arg9[%c64_153, %c0_154], %215 {strides = array<i32>} : memref<72x256xf32, #tpu.memory_space<vmem>>, vector<8x239xf32>,
    %c0_155 = arith.constant 0 : index
    %c0_156 = arith.constant 0 : index
    %c0_157 = arith.constant 0 : index
    %217 = vector.load %arg6[%c0_155, %c0_156, %c0_157] : memref<2x8x72xf32, #tpu.memory_space<vmem>>, vector<1x8x72xf32>
    %218 = vector.shape_cast %217 : vector<1x8x72xf32> to vector<8x72xf32>
    %c0_158 = arith.constant 0 : index
    %c0_159 = arith.constant 0 : index
    %219 = vector.load %arg9[%c0_158, %c0_159] : memref<72x256xf32, #tpu.memory_space<vmem>>, vector<72x256xf32>
    %cst_160 = arith.constant dense<0.000000e+00> : vector<8x256xf32>
    %220 = tpu.matmul %218, %219, %cst_160 {dimension_numbers = #tpu.dot_dimension_numbers<[1], [0], [0], [1], [0, 0, 1, 1], [], []>} : vector<8x72xf32>, vector<72x256xf32>, vector<8x256xf32> -> vector<8x256xf32>
    %c0_161 = arith.constant 0 : index
    %c0_162 = arith.constant 0 : index
    %c0_163 = arith.constant 0 : index
    %221 = vector.load %arg7[%c0_161, %c0_162, %c0_163] : memref<2x8x1xf32, #tpu.memory_space<vmem>>, vector<1x8x1xf32>
    %222 = vector.shape_cast %221 : vector<1x8x1xf32> to vector<8x1xf32>
    %223 = vector.broadcast %222 : vector<8x1xf32> to vector<8x256xf32>
    %224 = arith.addf %220, %223 : vector<8x256xf32>
    %225 = arith.addf %224, %109 : vector<8x256xf32>
    %cst_164 = arith.constant 0.000000e+00 : f32
    %226 = vector.broadcast %cst_164 : f32 to vector<8x256xf32>
    %227 = arith.cmpf ogt, %225, %226 : vector<8x256xf32>
    %cst_165 = arith.constant 1.000000e-01 : f32
    %228 = vector.broadcast %cst_165 : f32 to vector<8x256xf32>
    %229 = arith.mulf %228, %225 : vector<8x256xf32>
    %230 = arith.select %227, %225, %229 : vector<8x256xi1>, vector<8x256xf32>
    %c0_166 = arith.constant 0 : index
    %c0_167 = arith.constant 0 : index
    %c0_168 = arith.constant 0 : index
    %231 = vector.load %arg8[%c0_166, %c0_167, %c0_168] : memref<1x8x256xf32, #tpu.memory_space<vmem>>, vector<1x8x256xf32>
    %232 = vector.shape_cast %231 : vector<1x8x256xf32> to vector<8x256xf32>
    %233 = vector.shape_cast %230 : vector<8x256xf32> to vector<1x8x256xf32>
    tpu.vector_store %arg8[%c0_166, %c0_167, %c0_168], %233 {strides = array<i32>} : memref<1x8x256xf32, #tpu.memory_space<vmem>>, vector<1x8x256xf32>,
    %c0_169 = arith.constant 0 : index
    %c0_170 = arith.constant 0 : index
    %c0_171 = arith.constant 0 : index
    %234 = vector.load %arg8[%c0_169, %c0_170, %c0_171] : memref<1x8x256xf32, #tpu.memory_space<vmem>>, vector<1x8x256xf32>
    %235 = vector.shape_cast %234 : vector<1x8x256xf32> to vector<8x256xf32>
    %c0_172 = arith.constant 0 : index
    %c0_173 = arith.constant 0 : index
    %c0_174 = arith.constant 0 : index
    %236 = vector.load %arg8[%c0_172, %c0_173, %c0_174] : memref<1x8x256xf32, #tpu.memory_space<vmem>>, vector<1x8x239xf32>
    %237 = vector.shape_cast %236 : vector<1x8x239xf32> to vector<8x239xf32>
    %cst_175 = arith.constant 0.000000e+00 : f32
    %238 = vector.shape_cast %41 : vector<1x239xi1> to vector<1x239xi1>
    %239 = vector.broadcast %238 : vector<1x239xi1> to vector<8x239xi1>
    %240 = vector.broadcast %cst_175 : f32 to vector<8x239xf32>
    %241 = arith.select %239, %237, %240 : vector<8x239xi1>, vector<8x239xf32>
    %c0_176 = arith.constant 0 : index
    %c17_177 = arith.constant 17 : index
    %242 = vector.load %arg9[%c0_176, %c17_177] : memref<72x256xf32, #tpu.memory_space<vmem>>, vector<8x239xf32>
    tpu.vector_store %arg9[%c0_176, %c17_177], %241 {strides = array<i32>} : memref<72x256xf32, #tpu.memory_space<vmem>>, vector<8x239xf32>,
    %c0_178 = arith.constant 0 : index
    %c0_179 = arith.constant 0 : index
    %c0_180 = arith.constant 0 : index
    %243 = vector.load %arg8[%c0_178, %c0_179, %c0_180] : memref<1x8x256xf32, #tpu.memory_space<vmem>>, vector<1x8x240xf32>
    %244 = vector.shape_cast %243 : vector<1x8x240xf32> to vector<8x240xf32>
    %c8_181 = arith.constant 8 : index
    %c16_182 = arith.constant 16 : index
    %245 = vector.load %arg9[%c8_181, %c16_182] : memref<72x256xf32, #tpu.memory_space<vmem>>, vector<8x240xf32>
    tpu.vector_store %arg9[%c8_181, %c16_182], %244 {strides = array<i32>} : memref<72x256xf32, #tpu.memory_space<vmem>>, vector<8x240xf32>,
    %c0_183 = arith.constant 0 : index
    %c0_184 = arith.constant 0 : index
    %c0_185 = arith.constant 0 : index
    %246 = vector.load %arg8[%c0_183, %c0_184, %c0_185] : memref<1x8x256xf32, #tpu.memory_space<vmem>>, vector<1x8x241xf32>
    %247 = vector.shape_cast %246 : vector<1x8x241xf32> to vector<8x241xf32>
    %cst_186 = arith.constant 0.000000e+00 : f32
    %248 = vector.shape_cast %51 : vector<1x241xi1> to vector<1x241xi1>
    %249 = vector.broadcast %248 : vector<1x241xi1> to vector<8x241xi1>
    %250 = vector.broadcast %cst_186 : f32 to vector<8x241xf32>
    %251 = arith.select %249, %247, %250 : vector<8x241xi1>, vector<8x241xf32>
    %c16_187 = arith.constant 16 : index
    %c15_188 = arith.constant 15 : index
    %252 = vector.load %arg9[%c16_187, %c15_188] : memref<72x256xf32, #tpu.memory_space<vmem>>, vector<8x241xf32>
    tpu.vector_store %arg9[%c16_187, %c15_188], %251 {strides = array<i32>} : memref<72x256xf32, #tpu.memory_space<vmem>>, vector<8x241xf32>,
    %c0_189 = arith.constant 0 : index
    %c0_190 = arith.constant 0 : index
    %c0_191 = arith.constant 0 : index
    %253 = vector.load %arg8[%c0_189, %c0_190, %c0_191] : memref<1x8x256xf32, #tpu.memory_space<vmem>>, vector<1x8x255xf32>
    %254 = vector.shape_cast %253 : vector<1x8x255xf32> to vector<8x255xf32>
    %cst_192 = arith.constant 0.000000e+00 : f32
    %255 = vector.shape_cast %61 : vector<1x255xi1> to vector<1x255xi1>
    %256 = vector.broadcast %255 : vector<1x255xi1> to vector<8x255xi1>
    %257 = vector.broadcast %cst_192 : f32 to vector<8x255xf32>
    %258 = arith.select %256, %254, %257 : vector<8x255xi1>, vector<8x255xf32>
    %c24_193 = arith.constant 24 : index
    %c1_194 = arith.constant 1 : index
    %259 = vector.load %arg9[%c24_193, %c1_194] : memref<72x256xf32, #tpu.memory_space<vmem>>, vector<8x255xf32>
    tpu.vector_store %arg9[%c24_193, %c1_194], %258 {strides = array<i32>} : memref<72x256xf32, #tpu.memory_space<vmem>>, vector<8x255xf32>,
    %c0_195 = arith.constant 0 : index
    %c0_196 = arith.constant 0 : index
    %c0_197 = arith.constant 0 : index
    %260 = vector.load %arg8[%c0_195, %c0_196, %c0_197] : memref<1x8x256xf32, #tpu.memory_space<vmem>>, vector<1x8x256xf32>
    %261 = vector.shape_cast %260 : vector<1x8x256xf32> to vector<8x256xf32>
    %c32_198 = arith.constant 32 : index
    %c0_199 = arith.constant 0 : index
    %262 = vector.load %arg9[%c32_198, %c0_199] : memref<72x256xf32, #tpu.memory_space<vmem>>, vector<8x256xf32>
    tpu.vector_store %arg9[%c32_198, %c0_199], %261 {strides = array<i32>} : memref<72x256xf32, #tpu.memory_space<vmem>>, vector<8x256xf32>,
    %c0_200 = arith.constant 0 : index
    %c0_201 = arith.constant 0 : index
    %c1_202 = arith.constant 1 : index
    %263 = vector.load %arg8[%c0_200, %c0_201, %c1_202] : memref<1x8x256xf32, #tpu.memory_space<vmem>>, vector<1x8x255xf32>
    %264 = vector.shape_cast %263 : vector<1x8x255xf32> to vector<8x255xf32>
    %cst_203 = arith.constant 0.000000e+00 : f32
    %265 = vector.shape_cast %71 : vector<1x255xi1> to vector<1x255xi1>
    %266 = vector.broadcast %265 : vector<1x255xi1> to vector<8x255xi1>
    %267 = vector.broadcast %cst_203 : f32 to vector<8x255xf32>
    %268 = arith.select %266, %264, %267 : vector<8x255xi1>, vector<8x255xf32>
    %c40_204 = arith.constant 40 : index
    %c0_205 = arith.constant 0 : index
    %269 = vector.load %arg9[%c40_204, %c0_205] : memref<72x256xf32, #tpu.memory_space<vmem>>, vector<8x255xf32>
    tpu.vector_store %arg9[%c40_204, %c0_205], %268 {strides = array<i32>} : memref<72x256xf32, #tpu.memory_space<vmem>>, vector<8x255xf32>,
    %c0_206 = arith.constant 0 : index
    %c0_207 = arith.constant 0 : index
    %c15_208 = arith.constant 15 : index
    %270 = vector.load %arg8[%c0_206, %c0_207, %c15_208] : memref<1x8x256xf32, #tpu.memory_space<vmem>>, vector<1x8x241xf32>
    %271 = vector.shape_cast %270 : vector<1x8x241xf32> to vector<8x241xf32>
    %cst_209 = arith.constant 0.000000e+00 : f32
    %272 = vector.shape_cast %81 : vector<1x241xi1> to vector<1x241xi1>
    %273 = vector.broadcast %272 : vector<1x241xi1> to vector<8x241xi1>
    %274 = vector.broadcast %cst_209 : f32 to vector<8x241xf32>
    %275 = arith.select %273, %271, %274 : vector<8x241xi1>, vector<8x241xf32>
    %c48_210 = arith.constant 48 : index
    %c0_211 = arith.constant 0 : index
    %276 = vector.load %arg9[%c48_210, %c0_211] : memref<72x256xf32, #tpu.memory_space<vmem>>, vector<8x241xf32>
    tpu.vector_store %arg9[%c48_210, %c0_211], %275 {strides = array<i32>} : memref<72x256xf32, #tpu.memory_space<vmem>>, vector<8x241xf32>,
    %c0_212 = arith.constant 0 : index
    %c0_213 = arith.constant 0 : index
    %c16_214 = arith.constant 16 : index
    %277 = vector.load %arg8[%c0_212, %c0_213, %c16_214] : memref<1x8x256xf32, #tpu.memory_space<vmem>>, vector<1x8x240xf32>
    %278 = vector.shape_cast %277 : vector<1x8x240xf32> to vector<8x240xf32>
    %c56_215 = arith.constant 56 : index
    %c0_216 = arith.constant 0 : index
    %279 = vector.load %arg9[%c56_215, %c0_216] : memref<72x256xf32, #tpu.memory_space<vmem>>, vector<8x240xf32>
    tpu.vector_store %arg9[%c56_215, %c0_216], %278 {strides = array<i32>} : memref<72x256xf32, #tpu.memory_space<vmem>>, vector<8x240xf32>,
    %c0_217 = arith.constant 0 : index
    %c0_218 = arith.constant 0 : index
    %c17_219 = arith.constant 17 : index
    %280 = vector.load %arg8[%c0_217, %c0_218, %c17_219] : memref<1x8x256xf32, #tpu.memory_space<vmem>>, vector<1x8x239xf32>
    %281 = vector.shape_cast %280 : vector<1x8x239xf32> to vector<8x239xf32>
    %cst_220 = arith.constant 0.000000e+00 : f32
    %282 = vector.shape_cast %91 : vector<1x239xi1> to vector<1x239xi1>
    %283 = vector.broadcast %282 : vector<1x239xi1> to vector<8x239xi1>
    %284 = vector.broadcast %cst_220 : f32 to vector<8x239xf32>
    %285 = arith.select %283, %281, %284 : vector<8x239xi1>, vector<8x239xf32>
    %c64_221 = arith.constant 64 : index
    %c0_222 = arith.constant 0 : index
    %286 = vector.load %arg9[%c64_221, %c0_222] : memref<72x256xf32, #tpu.memory_space<vmem>>, vector<8x239xf32>
    tpu.vector_store %arg9[%c64_221, %c0_222], %285 {strides = array<i32>} : memref<72x256xf32, #tpu.memory_space<vmem>>, vector<8x239xf32>,
    %c1_223 = arith.constant 1 : index
    %c0_224 = arith.constant 0 : index
    %c0_225 = arith.constant 0 : index
    %287 = vector.load %arg4[%c1_223, %c0_224, %c0_225] : memref<2x8x72xf32, #tpu.memory_space<vmem>>, vector<1x8x72xf32>
    %288 = vector.shape_cast %287 : vector<1x8x72xf32> to vector<8x72xf32>
    %c0_226 = arith.constant 0 : index
    %c0_227 = arith.constant 0 : index
    %289 = vector.load %arg9[%c0_226, %c0_227] : memref<72x256xf32, #tpu.memory_space<vmem>>, vector<72x256xf32>
    %cst_228 = arith.constant dense<0.000000e+00> : vector<8x256xf32>
    %290 = tpu.matmul %288, %289, %cst_228 {dimension_numbers = #tpu.dot_dimension_numbers<[1], [0], [0], [1], [0, 0, 1, 1], [], []>} : vector<8x72xf32>, vector<72x256xf32>, vector<8x256xf32> -> vector<8x256xf32>
    %c1_229 = arith.constant 1 : index
    %c0_230 = arith.constant 0 : index
    %c0_231 = arith.constant 0 : index
    %291 = vector.load %arg5[%c1_229, %c0_230, %c0_231] : memref<2x8x1xf32, #tpu.memory_space<vmem>>, vector<1x8x1xf32>
    %292 = vector.shape_cast %291 : vector<1x8x1xf32> to vector<8x1xf32>
    %293 = vector.broadcast %292 : vector<8x1xf32> to vector<8x256xf32>
    %294 = arith.addf %290, %293 : vector<8x256xf32>
    %cst_232 = arith.constant 0.000000e+00 : f32
    %295 = vector.broadcast %cst_232 : f32 to vector<8x256xf32>
    %296 = arith.cmpf ogt, %294, %295 : vector<8x256xf32>
    %cst_233 = arith.constant 1.000000e-01 : f32
    %297 = vector.broadcast %cst_233 : f32 to vector<8x256xf32>
    %298 = arith.mulf %297, %294 : vector<8x256xf32>
    %299 = arith.select %296, %294, %298 : vector<8x256xi1>, vector<8x256xf32>
    %c0_234 = arith.constant 0 : index
    %c0_235 = arith.constant 0 : index
    %300 = vector.load %arg10[%c0_234, %c0_235] : memref<8x256xf32, #tpu.memory_space<vmem>>, vector<8x256xf32>
    tpu.vector_store %arg10[%c0_234, %c0_235], %299 {strides = array<i32>} : memref<8x256xf32, #tpu.memory_space<vmem>>, vector<8x256xf32>,
    %c0_236 = arith.constant 0 : index
    %c0_237 = arith.constant 0 : index
    %301 = vector.load %arg10[%c0_236, %c0_237] : memref<8x256xf32, #tpu.memory_space<vmem>>, vector<8x239xf32>
    %cst_238 = arith.constant 0.000000e+00 : f32
    %302 = vector.shape_cast %41 : vector<1x239xi1> to vector<1x239xi1>
    %303 = vector.broadcast %302 : vector<1x239xi1> to vector<8x239xi1>
    %304 = vector.broadcast %cst_238 : f32 to vector<8x239xf32>
    %305 = arith.select %303, %301, %304 : vector<8x239xi1>, vector<8x239xf32>
    %c0_239 = arith.constant 0 : index
    %c17_240 = arith.constant 17 : index
    %306 = vector.load %arg9[%c0_239, %c17_240] : memref<72x256xf32, #tpu.memory_space<vmem>>, vector<8x239xf32>
    tpu.vector_store %arg9[%c0_239, %c17_240], %305 {strides = array<i32>} : memref<72x256xf32, #tpu.memory_space<vmem>>, vector<8x239xf32>,
    %c0_241 = arith.constant 0 : index
    %c0_242 = arith.constant 0 : index
    %307 = vector.load %arg10[%c0_241, %c0_242] : memref<8x256xf32, #tpu.memory_space<vmem>>, vector<8x240xf32>
    %c8_243 = arith.constant 8 : index
    %c16_244 = arith.constant 16 : index
    %308 = vector.load %arg9[%c8_243, %c16_244] : memref<72x256xf32, #tpu.memory_space<vmem>>, vector<8x240xf32>
    tpu.vector_store %arg9[%c8_243, %c16_244], %307 {strides = array<i32>} : memref<72x256xf32, #tpu.memory_space<vmem>>, vector<8x240xf32>,
    %c0_245 = arith.constant 0 : index
    %c0_246 = arith.constant 0 : index
    %309 = vector.load %arg10[%c0_245, %c0_246] : memref<8x256xf32, #tpu.memory_space<vmem>>, vector<8x241xf32>
    %cst_247 = arith.constant 0.000000e+00 : f32
    %310 = vector.shape_cast %51 : vector<1x241xi1> to vector<1x241xi1>
    %311 = vector.broadcast %310 : vector<1x241xi1> to vector<8x241xi1>
    %312 = vector.broadcast %cst_247 : f32 to vector<8x241xf32>
    %313 = arith.select %311, %309, %312 : vector<8x241xi1>, vector<8x241xf32>
    %c16_248 = arith.constant 16 : index
    %c15_249 = arith.constant 15 : index
    %314 = vector.load %arg9[%c16_248, %c15_249] : memref<72x256xf32, #tpu.memory_space<vmem>>, vector<8x241xf32>
    tpu.vector_store %arg9[%c16_248, %c15_249], %313 {strides = array<i32>} : memref<72x256xf32, #tpu.memory_space<vmem>>, vector<8x241xf32>,
    %c0_250 = arith.constant 0 : index
    %c0_251 = arith.constant 0 : index
    %315 = vector.load %arg10[%c0_250, %c0_251] : memref<8x256xf32, #tpu.memory_space<vmem>>, vector<8x255xf32>
    %cst_252 = arith.constant 0.000000e+00 : f32
    %316 = vector.shape_cast %61 : vector<1x255xi1> to vector<1x255xi1>
    %317 = vector.broadcast %316 : vector<1x255xi1> to vector<8x255xi1>
    %318 = vector.broadcast %cst_252 : f32 to vector<8x255xf32>
    %319 = arith.select %317, %315, %318 : vector<8x255xi1>, vector<8x255xf32>
    %c24_253 = arith.constant 24 : index
    %c1_254 = arith.constant 1 : index
    %320 = vector.load %arg9[%c24_253, %c1_254] : memref<72x256xf32, #tpu.memory_space<vmem>>, vector<8x255xf32>
    tpu.vector_store %arg9[%c24_253, %c1_254], %319 {strides = array<i32>} : memref<72x256xf32, #tpu.memory_space<vmem>>, vector<8x255xf32>,
    %c0_255 = arith.constant 0 : index
    %c0_256 = arith.constant 0 : index
    %321 = vector.load %arg10[%c0_255, %c0_256] : memref<8x256xf32, #tpu.memory_space<vmem>>, vector<8x256xf32>
    %c32_257 = arith.constant 32 : index
    %c0_258 = arith.constant 0 : index
    %322 = vector.load %arg9[%c32_257, %c0_258] : memref<72x256xf32, #tpu.memory_space<vmem>>, vector<8x256xf32>
    tpu.vector_store %arg9[%c32_257, %c0_258], %321 {strides = array<i32>} : memref<72x256xf32, #tpu.memory_space<vmem>>, vector<8x256xf32>,
    %c0_259 = arith.constant 0 : index
    %c1_260 = arith.constant 1 : index
    %323 = vector.load %arg10[%c0_259, %c1_260] : memref<8x256xf32, #tpu.memory_space<vmem>>, vector<8x255xf32>
    %cst_261 = arith.constant 0.000000e+00 : f32
    %324 = vector.shape_cast %71 : vector<1x255xi1> to vector<1x255xi1>
    %325 = vector.broadcast %324 : vector<1x255xi1> to vector<8x255xi1>
    %326 = vector.broadcast %cst_261 : f32 to vector<8x255xf32>
    %327 = arith.select %325, %323, %326 : vector<8x255xi1>, vector<8x255xf32>
    %c40_262 = arith.constant 40 : index
    %c0_263 = arith.constant 0 : index
    %328 = vector.load %arg9[%c40_262, %c0_263] : memref<72x256xf32, #tpu.memory_space<vmem>>, vector<8x255xf32>
    tpu.vector_store %arg9[%c40_262, %c0_263], %327 {strides = array<i32>} : memref<72x256xf32, #tpu.memory_space<vmem>>, vector<8x255xf32>,
    %c0_264 = arith.constant 0 : index
    %c15_265 = arith.constant 15 : index
    %329 = vector.load %arg10[%c0_264, %c15_265] : memref<8x256xf32, #tpu.memory_space<vmem>>, vector<8x241xf32>
    %cst_266 = arith.constant 0.000000e+00 : f32
    %330 = vector.shape_cast %81 : vector<1x241xi1> to vector<1x241xi1>
    %331 = vector.broadcast %330 : vector<1x241xi1> to vector<8x241xi1>
    %332 = vector.broadcast %cst_266 : f32 to vector<8x241xf32>
    %333 = arith.select %331, %329, %332 : vector<8x241xi1>, vector<8x241xf32>
    %c48_267 = arith.constant 48 : index
    %c0_268 = arith.constant 0 : index
    %334 = vector.load %arg9[%c48_267, %c0_268] : memref<72x256xf32, #tpu.memory_space<vmem>>, vector<8x241xf32>
    tpu.vector_store %arg9[%c48_267, %c0_268], %333 {strides = array<i32>} : memref<72x256xf32, #tpu.memory_space<vmem>>, vector<8x241xf32>,
    %c0_269 = arith.constant 0 : index
    %c16_270 = arith.constant 16 : index
    %335 = vector.load %arg10[%c0_269, %c16_270] : memref<8x256xf32, #tpu.memory_space<vmem>>, vector<8x240xf32>
    %c56_271 = arith.constant 56 : index
    %c0_272 = arith.constant 0 : index
    %336 = vector.load %arg9[%c56_271, %c0_272] : memref<72x256xf32, #tpu.memory_space<vmem>>, vector<8x240xf32>
    tpu.vector_store %arg9[%c56_271, %c0_272], %335 {strides = array<i32>} : memref<72x256xf32, #tpu.memory_space<vmem>>, vector<8x240xf32>,
    %c0_273 = arith.constant 0 : index
    %c17_274 = arith.constant 17 : index
    %337 = vector.load %arg10[%c0_273, %c17_274] : memref<8x256xf32, #tpu.memory_space<vmem>>, vector<8x239xf32>
    %cst_275 = arith.constant 0.000000e+00 : f32
    %338 = vector.shape_cast %91 : vector<1x239xi1> to vector<1x239xi1>
    %339 = vector.broadcast %338 : vector<1x239xi1> to vector<8x239xi1>
    %340 = vector.broadcast %cst_275 : f32 to vector<8x239xf32>
    %341 = arith.select %339, %337, %340 : vector<8x239xi1>, vector<8x239xf32>
    %c64_276 = arith.constant 64 : index
    %c0_277 = arith.constant 0 : index
    %342 = vector.load %arg9[%c64_276, %c0_277] : memref<72x256xf32, #tpu.memory_space<vmem>>, vector<8x239xf32>
    tpu.vector_store %arg9[%c64_276, %c0_277], %341 {strides = array<i32>} : memref<72x256xf32, #tpu.memory_space<vmem>>, vector<8x239xf32>,
    %c1_278 = arith.constant 1 : index
    %c0_279 = arith.constant 0 : index
    %c0_280 = arith.constant 0 : index
    %343 = vector.load %arg6[%c1_278, %c0_279, %c0_280] : memref<2x8x72xf32, #tpu.memory_space<vmem>>, vector<1x8x72xf32>
    %344 = vector.shape_cast %343 : vector<1x8x72xf32> to vector<8x72xf32>
    %c0_281 = arith.constant 0 : index
    %c0_282 = arith.constant 0 : index
    %345 = vector.load %arg9[%c0_281, %c0_282] : memref<72x256xf32, #tpu.memory_space<vmem>>, vector<72x256xf32>
    %cst_283 = arith.constant dense<0.000000e+00> : vector<8x256xf32>
    %346 = tpu.matmul %344, %345, %cst_283 {dimension_numbers = #tpu.dot_dimension_numbers<[1], [0], [0], [1], [0, 0, 1, 1], [], []>} : vector<8x72xf32>, vector<72x256xf32>, vector<8x256xf32> -> vector<8x256xf32>
    %c1_284 = arith.constant 1 : index
    %c0_285 = arith.constant 0 : index
    %c0_286 = arith.constant 0 : index
    %347 = vector.load %arg7[%c1_284, %c0_285, %c0_286] : memref<2x8x1xf32, #tpu.memory_space<vmem>>, vector<1x8x1xf32>
    %348 = vector.shape_cast %347 : vector<1x8x1xf32> to vector<8x1xf32>
    %349 = vector.broadcast %348 : vector<8x1xf32> to vector<8x256xf32>
    %350 = arith.addf %346, %349 : vector<8x256xf32>
    %351 = arith.addf %350, %235 : vector<8x256xf32>
    %cst_287 = arith.constant 0.000000e+00 : f32
    %352 = vector.broadcast %cst_287 : f32 to vector<8x256xf32>
    %353 = arith.cmpf ogt, %351, %352 : vector<8x256xf32>
    %cst_288 = arith.constant 1.000000e-01 : f32
    %354 = vector.broadcast %cst_288 : f32 to vector<8x256xf32>
    %355 = arith.mulf %354, %351 : vector<8x256xf32>
    %356 = arith.select %353, %351, %355 : vector<8x256xi1>, vector<8x256xf32>
    %c0_289 = arith.constant 0 : index
    %c0_290 = arith.constant 0 : index
    %c0_291 = arith.constant 0 : index
    %357 = vector.load %arg8[%c0_289, %c0_290, %c0_291] : memref<1x8x256xf32, #tpu.memory_space<vmem>>, vector<1x8x256xf32>
    %358 = vector.shape_cast %357 : vector<1x8x256xf32> to vector<8x256xf32>
    %359 = vector.shape_cast %356 : vector<8x256xf32> to vector<1x8x256xf32>
    tpu.vector_store %arg8[%c0_289, %c0_290, %c0_291], %359 {strides = array<i32>} : memref<1x8x256xf32, #tpu.memory_space<vmem>>, vector<1x8x256xf32>,
    return
  }
  func.func @transform_0(%arg0: i32) -> (i32, i32, i32) {
    %c0_i32 = arith.constant 0 : i32
    %c0_i32_0 = arith.constant 0 : i32
    %c0_i32_1 = arith.constant 0 : i32
    return %arg0, %c0_i32, %c0_i32_0 : i32, i32, i32
  }
  func.func @transform_1(%arg0: i32) -> (i32, i32) {
    %c0_i32 = arith.constant 0 : i32
    %c0_i32_0 = arith.constant 0 : i32
    %c0_i32_1 = arith.constant 0 : i32
    return %c0_i32, %c0_i32_0 : i32, i32
  }
  func.func @transform_2(%arg0: i32) -> (i32, i32) {
    %c0_i32 = arith.constant 0 : i32
    %c0_i32_0 = arith.constant 0 : i32
    %c0_i32_1 = arith.constant 0 : i32
    return %c0_i32, %c0_i32_0 : i32, i32
  }
  func.func @transform_3(%arg0: i32) -> (i32, i32, i32) {
    %c0_i32 = arith.constant 0 : i32
    %c0_i32_0 = arith.constant 0 : i32
    %c0_i32_1 = arith.constant 0 : i32
    %c0_i32_2 = arith.constant 0 : i32
    return %c0_i32, %c0_i32_0, %c0_i32_1 : i32, i32, i32
  }
  func.func @transform_4(%arg0: i32) -> (i32, i32, i32) {
    %c0_i32 = arith.constant 0 : i32
    %c0_i32_0 = arith.constant 0 : i32
    %c0_i32_1 = arith.constant 0 : i32
    %c0_i32_2 = arith.constant 0 : i32
    return %c0_i32, %c0_i32_0, %c0_i32_1 : i32, i32, i32
  }
  func.func @transform_5(%arg0: i32) -> (i32, i32, i32) {
    %c0_i32 = arith.constant 0 : i32
    %c0_i32_0 = arith.constant 0 : i32
    %c0_i32_1 = arith.constant 0 : i32
    %c0_i32_2 = arith.constant 0 : i32
    return %c0_i32, %c0_i32_0, %c0_i32_1 : i32, i32, i32
  }
  func.func @transform_6(%arg0: i32) -> (i32, i32, i32) {
    %c0_i32 = arith.constant 0 : i32
    %c0_i32_0 = arith.constant 0 : i32
    %c0_i32_1 = arith.constant 0 : i32
    %c0_i32_2 = arith.constant 0 : i32
    return %c0_i32, %c0_i32_0, %c0_i32_1 : i32, i32, i32
  }
  func.func @transform_7(%arg0: i32) -> (i32, i32, i32) {
    %c0_i32 = arith.constant 0 : i32
    %c0_i32_0 = arith.constant 0 : i32
    %c0_i32_1 = arith.constant 0 : i32
    return %arg0, %c0_i32, %c0_i32_0 : i32, i32, i32
  }
}

</mosaic_0001>

<bundles_post_ra>
// kernel: tpu_custom_call.1
= control target key start
LH: loop header
LB: loop body
LE: loop exit
PB: predicated region body
PF: predicated region fallthrough
CT: control target
= control target key end

     0   :  { %12 = vsyncpa [#allocation5], 0  ;;  %s2250_s0 = inlined_call_operand.vmem [shape: f32[2,4,256], index: 0, kind: input, shape index: {}]   ;;  %s2251_s1 = inlined_call_operand.vmem [shape: f32[8,4], index: 1, kind: input, shape index: {}]   ;;  %s2252_s2 = inlined_call_operand.vmem [shape: f32[8,1], index: 2, kind: input, shape index: {}]   ;;  %s2253_s3 = inlined_call_operand.vmem [shape: f32[2,8,72], index: 3, kind: input, shape index: {}]   ;;  %s2254_s4 = inlined_call_operand.vmem [shape: f32[2,8,1], index: 4, kind: input, shape index: {}]   ;;  %s2255_s5 = inlined_call_operand.vmem [shape: f32[2,8,72], index: 5, kind: input, shape index: {}]   ;;  %s2256_s6 = inlined_call_operand.vmem [shape: f32[2,8,1], index: 6, kind: input, shape index: {}]   ;;  %s2257_s7 = inlined_call_operand.hbm [shape: f32[2,8,256], index: 7, kind: output, shape index: {}]  }
   0x1   :  { %14 = vsyncpa [#allocation5 + $0x1], 0  ;;  %s1750_s24 = smov 0   ;;  %s1752_s25 = smov 0  }
   0x2   :  { %s1754_s26 = smov 0   ;;  %s1756_s27 = smov 0  }
   0x3 LB: > { %s1771_s28 = sadd.s32 4294967295, %s1696_s27   ;;  %s1441_s29 = sadd.s32 4294967294, %s1696_s27   ;;  %s1696_s27 = sphi %s1756_s27, %s2314_s27   ;;  %s1692_s26 = sphi %s1754_s26, %s2313_s26   ;;  %s1688_s25 = sphi %s1752_s25, %s2312_s25   ;;  %s1684_s24 = sphi %s1750_s24, %s2311_s24  }
   0x4   : > { %s1775_s30 = sadd.s32 1, %s1696_s27   ;;  %s179_s8 = sadd.s32 1, %s1692_s26 }
   0x5   : > { %s176_s9 = ssub.s32 %s1696_s27, %s1775_s30  ;;  %p189_p0 = scmp.ne.s32.totalorder %s1692_s26, %s1688_s25 }
   0x6   : > { %p177_p1 = scmp.eq.s32.totalorder %s176_s9, 0  ;;  %p190_p2 = scmp.eq.s32.totalorder %s1771_s28, 1 }
   0x7   : > { %p195_p3 = scmp.ne.s32.totalorder %s1688_s25, %s1684_s24  ;;  %p196_p4 = scmp.eq.s32.totalorder %s1441_s29, 1 }
   0x8   : > { %s1786_s10 = scalar_select %p177_p1, %s1692_s26, %s179_s8  }
   0x9   : > { %p1788_p5 = por %p190_p2, %p189_p0  ;;  %p1792_p6 = por %p196_p4, %p195_p3 }
   0xa   : > { %p1444_p7 = scmp.ge.s32.totalorder %s1696_s27, 1  ;;  %p240_p8 = scmp.lt.s32.totalorder %s1696_s27, 3 }
   0xc   : > { %p241_p9 = pnand %p1444_p7, %p240_p8 }
   0xd   : > { %p272_p10 = scmp.lt.s32.totalorder (!%p241_p9), %s1771_s28, 1  ;;  %v1698_v0 = vmov (!%p241_p9), 0.0   ;;  %v1699_v1 = vmov (!%p241_p9), 0   ;;  %v279_v2 = vld [vmem:[%s2252_s2] sm:$0xff] (!%p241_p9)  ;;  %vm291_vm0 = vcmask (!%p241_p9), 1043456   ;;  %vm287_vm1 = vcmask (!%p241_p9), 31744  }
   0xe   : > { %244 = sbr.rel (%p241_p9) target bundleno = 1757 (0x6dd), region = 48  ;;  %360 = vmatprep.mubr.f32.mxu0 (!%p241_p9), %v1698_v0  ;;  %1579 = vset.pattern.permute.xlu0 (!%p241_p9), %v1699_v1  ;;  %v277_v5 = vld [vmem:[%s2251_s1] sm:$0xff] (!%p241_p9)  ;;  %vm2265_vm2 = vcmask (!%p241_p9), 130048   ;;  %vm418_vm3 = vcmask (!%p241_p9), 138240   ;;  %vm2260_vm4 = vcmask (!%p241_p9), 121856   ;;  %vm2258_vm5 = vcmask (!%p241_p9), 7168  }
   0xf   : > { %282 = vperm.xlu0 (!%p241_p9), %1579, %v279_v2   ;;  %663 = vmatprep.mubr.f32.mxu1 (!%p241_p9), %v1698_v0  ;;  %421 = vst.msk [vmem:[#allocation2 + $0x10] sm:$0xff] (!%p241_p9), %vm2265_vm2, %v1698_v0  ;;  %s1700_s22 = smov (!%p241_p9), 16   ;;  %s1701_s23 = smov (!%p241_p9), 17   ;;  %vm426_vm8 = vcmask (!%p241_p9), 1048568   ;;  %vm428_vm9 = vcmask (!%p241_p9), 1048456   ;;  %vm430_vm10 = vcmask (!%p241_p9), 1048448   ;;  %v375_v16 = vlaneseq (!%p241_p9) }
  0x10   : > { %1580 = vset.pattern.permute.xlu1 (!%p241_p9), %v1699_v1  ;;  %419 = vst.msk [vmem:[#allocation2] sm:$0xff] (!%p241_p9), %vm418_vm3, %v1698_v0  ;;  %s1702_s29 = smov (!%p241_p9), 15   ;;  %s1703_s8 = smov (!%p241_p9), 1   ;;  %vm432_vm11 = vcmask (!%p241_p9), 1048440   ;;  %v589_v15 = vld [vmem:[%s2254_s4] sm:$0xff] (!%p241_p9)  ;;  %vm465_vm12 = vcmask (!%p241_p9), 1047680  }
  0x11   : > { %423 = vst.msk [vmem:[#allocation2 + $0x20] sm:$0xff] (!%p241_p9), %vm2260_vm4, %v1698_v0  ;;  %s1704_s9 = smov (!%p241_p9), 127   ;;  %s1705_s13 = smov (!%p241_p9), 113   ;;  %v376_v17 = vand.u32 (!%p241_p9), 127, %v375_v16  ;;  %vm451_vm14 = vcmask (!%p241_p9), 1047688  }
  0x12   : > { %425 = vst.msk [vmem:[#allocation2 + $0x30] sm:$0xff] (!%p241_p9), %vm2258_vm5, %v1698_v0  ;;  %s1706_s14 = smov (!%p241_p9), 112   ;;  %s1709_s21 = smov (!%p241_p9), [#allocation4]  }
  0x13   : > { %427 = vst.msk [vmem:[#allocation2 + $0x58] sm:$0xff] (!%p241_p9), %vm426_vm8, %v1698_v0  ;;  %v382_v18 = vand.u32 (!%p241_p9), 15, %v376_v17  ;;  %v377_v20 = vadd.s32 (!%p241_p9), 128, %v376_v17  ;;  %vm1708_vm8 = vmmov (!%p241_p9), 1  }
  0x14   : > { %429 = vst.msk [vmem:[#allocation2 + $0x68] sm:$0xff] (!%p241_p9), %vm428_vm9, %v1698_v0 }
  0x15   : > { %s273_s15 = scalar_select %p272_p10, %s1771_s28, 1  ;;  %431 = vst.msk [vmem:[#allocation2 + $0x78] sm:$0xff] %vm430_vm10, %v1698_v0  ;;  %v1863_v19 = vadd.s32 4294967295, %v382_v18  ;;  %v1866_v21 = vadd.s32 1, %v382_v18  ;;  %v389_v22 = vand.u32 15, %v377_v20  ;;  %vm2262_vm10 = vcmask 1039360  }
  0x16   : > { %433 = vst.msk [vmem:[#allocation2 + $0x88] sm:$0xff] %vm432_vm11, %v1698_v0 }
  0x17   : > { %s1464_s16 = sshll.u32 %s273_s15, 3  ;;  %s1707_s15 = smov 111   ;;  %vm404_vm13 = vcmp.ge.s32.totalorder %v1863_v19, 0  ;;  %vm414_vm15 = vcmp.lt.s32.totalorder %v1866_v21, 16  ;;  %v1873_v26 = vadd.s32 4294967295, %v389_v22  ;;  %v1879_v30 = vadd.s32 1, %v389_v22 }
  0x18   : > { %s276_s19 = scalar_lea.vmem %s2250_s0, %s1464_s16 }
  0x19   : > { %v278_v3 = vld [vmem:[%s276_s19] sm:$0xff] }
  0x1a   : > { %v286_v4 = vcombine.high %v278_v3, %v278_v3 }
  0x1c   : > { %1448 = vmatprep.subr.msk.mxu0 %vm291_vm0, %v286_v4 }
  0x1d   : > { %1449 = vmatpush1.msk.msra.mxu0 %vm291_vm0, %v278_v3  ;;  %vm2266_vm0 = vcmask 1047672  }
  0x1e   : > { %1450 = vmatmul.mubr.msk.f32.vlgmr.msra.gmra.mrb[0].mxu0 %vm287_vm1, %v277_v5  ;;  %vm2261_vm1 = vcmp.ge.s32.totalorder %v1873_v26, 0 }
  0x1f   : > { %890 = vmatprep.mubr.f32.mxu0 %v1698_v0  ;;  %vm1891_vm9 = vmpackc.low %vm1708_vm8, %vm2261_vm1 }
  0x8e   : > { %v283_v6 = vpop.permute.xlu0 %282 }
  0xf1   : > { %v362_v7 = vpop.f32.mrb[0].mxu0 }
  0xf2   : > { %v363_v8 = vadd.f32 %v362_v7, %v283_v6  ;;  %v364_v9 = vpop.f32.mrb[1].mxu0 }
  0xf3   : > { %v365_v10 = vadd.f32 %v364_v9, %v283_v6 }
  0xf4   : > { %vm367_vm6 = vcmp.gt.f32.partialorder %v363_v8, 0.0  ;;  %v369_v11 = vmul.f32 0.1, %v363_v8 }
  0xf5   : > { %v370_v13 = vmul.f32 0.1, %v365_v10  ;;  %vm368_vm7 = vcmp.gt.f32.partialorder %v365_v10, 0.0 }
  0xf6   : > { %v1820_v12 = vsel %vm367_vm6, %v363_v8, %v369_v11  ;;  %vm415_vm6 = vcmp.lt.s32.totalorder %v1879_v30, 16  ;;  %v1456_v30 = vld [vmem:[%s2255_s5 + $0x8] sm:$0xff] }
  0xf7   : > { %458 = vrot.lane.b32.xlu1 %v1820_v12, %s1700_s22  ;;  %442 = vrot.lane.b32.xlu0 %v1820_v12, %s1701_s23  ;;  %v1826_v14 = vsel %vm368_vm7, %v365_v10, %v370_v13  ;;  %vm2259_vm7 = vcmask 1047560   ;;  %vm1904_vm11 = vmpackc.low %vm2261_vm1, %vm415_vm6  ;;  %v570_v13 = vld [vmem:[%s2253_s3] sm:$0xff] }
  0xfb   : > { %476 = vrot.lane.b32.xlu1 %v1820_v12, %s1702_s29  ;;  %460 = vrot.lane.b32.xlu0 %v1826_v14, %s1700_s22 }
  0xff   : > { %444 = vrot.lane.b32.xlu1 %v1826_v14, %s1701_s23  ;;  %478 = vrot.lane.b32.xlu0 %v1826_v14, %s1702_s29 }
 0x103   : > { %492 = vrot.lane.b32.xlu1 %v1820_v12, %s1703_s8  ;;  %494 = vrot.lane.b32.xlu0 %v1826_v14, %s1703_s8 }
 0x107   : > { %512 = vrot.lane.b32.xlu1 %v1820_v12, %s1704_s9  ;;  %514 = vrot.lane.b32.xlu0 %v1826_v14, %s1704_s9 }
 0x10b   : > { %528 = vrot.lane.b32.xlu1 %v1820_v12, %s1705_s13  ;;  %530 = vrot.lane.b32.xlu0 %v1826_v14, %s1705_s13 }
 0x10f   : > { %544 = vrot.lane.b32.xlu1 %v1820_v12, %s1706_s14  ;;  %546 = vrot.lane.b32.xlu0 %v1826_v14, %s1706_s14 }
 0x113   : > { %558 = vrot.lane.b32.xlu1 %v1820_v12, %s1707_s15  ;;  %560 = vrot.lane.b32.xlu0 %v1826_v14, %s1707_s15 }
 0x117   : > { %592 = vperm.xlu1 %1580, %v589_v15  }
 0x169   : > { %v459_v23 = vpop.permute.xlu1 %458  ;;  %v443_v24 = vpop.permute.xlu0 %442 }
 0x16a   : > { %466 = vst.msk [vmem:[#allocation2 + $0x10] sm:$0xff] %vm465_vm12, %v459_v23  ;;  %v449_v25 = vsel %vm404_vm13, %v443_v24, 0.0 }
 0x16b   : > { %452 = vst.msk [vmem:[#allocation2] sm:$0xff] %vm451_vm14, %v449_v25 }
 0x16d   : > { %v477_v27 = vpop.permute.xlu1 %476  ;;  %v461_v28 = vpop.permute.xlu0 %460 }
 0x16e   : > { %v483_v29 = vsel %vm414_vm15, %v477_v27, 0.0  ;;  %v462_v36 = vsel %vm2265_vm2, %v459_v23, %v461_v28 }
 0x16f   : > { %486 = vst.msk [vmem:[#allocation2 + $0x20] sm:$0xff] %vm2266_vm0, %v483_v29 }
 0x171   : > { %v445_v31 = vpop.permute.xlu1 %444  ;;  %v479_v32 = vpop.permute.xlu0 %478  ;;  %v573_v35 = vld [vmem:[#allocation2 + $0x10] sm:$0xff] }
 0x172   : > { %v446_v33 = vsel %vm418_vm3, %v443_v24, %v445_v31  ;;  %v571_v34 = vld [vmem:[#allocation2] sm:$0xff]  ;;  %v480_v37 = vsel %vm2260_vm4, %v477_v27, %v479_v32  ;;  %vm2264_vm4 = vcmask 908288  }
 0x173   : > { %v1468_v40 = vpack.c.bf16 %v573_v35, %v571_v34  ;;  %v1583_v44 = vpack.c.bf16 %v462_v36, %v446_v33  ;;  %v817_v27 = vld [vmem:[%s2256_s6] sm:$0xff] }
 0x175   : > { %v493_v38 = vpop.permute.xlu1 %492  ;;  %v495_v39 = vpop.permute.xlu0 %494  ;;  %1584 = vmatprep.subr.msk.bf16.mxu1 %vm1891_vm9, %v1583_v44 }
 0x176   : > { %v499_v41 = vsel %vm404_vm13, %v493_v38, 0.0  ;;  %v496_v42 = vsel %vm2258_vm5, %v493_v38, %v495_v39  ;;  %1469 = vmatpush1.bf16.msra.mxu1 %v1468_v40  ;;  %vm532_vm5 = vcmask 924672   ;;  %v575_v54 = vld [vmem:[#allocation2 + $0x20] sm:$0xff] }
 0x177   : > { %502 = vst.msk [vmem:[#allocation2 + $0x30] sm:$0xff] %vm2259_vm7, %v499_v41  ;;  %v1586_v49 = vpack.c.bf16 %v496_v42, %v480_v37  ;;  %vm2263_vm7 = vcmask 916480  }
 0x179   : > { %v513_v45 = vpop.permute.xlu1 %512  ;;  %v515_v46 = vpop.permute.xlu0 %514  ;;  %1587 = vmatprep.subr.msk.bf16.mxu1 %vm1904_vm11, %v1586_v49 }
 0x17a   : > { %v521_v47 = vsel %vm415_vm6, %v515_v46, 0.0  ;;  %v517_v51 = vsel %vm2262_vm10, %v513_v45, %v515_v46 }
 0x17b   : > { %523 = vst.msk [vmem:[#allocation2 + $0x58] sm:$0xff] %vm2262_vm10, %v521_v47  ;;  %v1589_v1 = vpack.c.bf16 %v517_v51, %v1820_v12  ;;  %vm1936_vm10 = vmpackc.low %vm1708_vm8, %vm404_vm13 }
 0x17d   : > { %v531_v50 = vpop.permute.xlu0 %530  ;;  %v529_v52 = vpop.permute.xlu1 %528 }
 0x17e   : > { %v537_v53 = vsel %vm2261_vm1, %v531_v50, 0.0  ;;  %v577_v55 = vld [vmem:[#allocation2 + $0x30] sm:$0xff]  ;;  %vm1922_vm1 = vmpackc.low %vm414_vm15, %vm1708_vm8  ;;  %v533_v2 = vsel %vm532_vm5, %v529_v52, %v531_v50 }
 0x17f   : > { %539 = vst.msk [vmem:[#allocation2 + $0x68] sm:$0xff] %vm532_vm5, %v537_v53  ;;  %v1472_v56 = vpack.c.bf16 %v577_v55, %v575_v54 }
 0x181   : > { %v547_v57 = vpop.permute.xlu0 %546  ;;  %1473 = vmatpush1.bf16.msra.mxu1 %v1472_v56  ;;  %v545_v60 = vpop.permute.xlu1 %544 }
 0x182   : > { %553 = vst.msk [vmem:[#allocation2 + $0x78] sm:$0xff] %vm2263_vm7, %v547_v57  ;;  %v582_v58 = vld [vmem:[#allocation2 + $0x58] sm:$0xff]  ;;  %v549_v3 = vsel %vm2263_vm7, %v545_v60, %v547_v57  ;;  %vm595_vm7 = vcmask 588800  }
 0x183   : > { %v1474_v59 = vpack.c.bf16 %v582_v58, %v1826_v14  ;;  %v1592_v10 = vpack.c.bf16 %v549_v3, %v533_v2 }
 0x185   : > { %1475 = vmatprep.subr.bf16.mxu1 %v1474_v59  ;;  %v561_v61 = vpop.permute.xlu0 %560  ;;  %v559_v6 = vpop.permute.xlu1 %558 }
 0x186   : > { %v567_v62 = vsel %vm415_vm6, %v561_v61, 0.0  ;;  %1590 = vmatpush1.bf16.msk.msra.mxu1 %vm1922_vm1, %v1589_v1  ;;  %v584_v4 = vld [vmem:[#allocation2 + $0x68] sm:$0xff]  ;;  %v563_v8 = vsel %vm2264_vm4, %v559_v6, %v561_v61 }
 0x187   : > { %569 = vst.msk [vmem:[#allocation2 + $0x88] sm:$0xff] %vm2264_vm4, %v567_v62 }
 0x189   : > { %v586_v5 = vld [vmem:[#allocation2 + $0x78] sm:$0xff] }
 0x18a   : > { %v1478_v7 = vpack.c.bf16 %v586_v5, %v584_v4 }
 0x18c   : > { %1479 = vmatprep.subr.bf16.mxu1 %v1478_v7 }
 0x18d   : > { %1593 = vmatpush1.bf16.msk.msra.mxu1 %vm1936_vm10, %v1592_v10 }
 0x18e   : > { %v588_v11 = vld [vmem:[#allocation2 + $0x88] sm:$0xff] }
 0x18f   : > { %615 = vmatprep.subr.mxu1 %v588_v11 }
 0x191   : > { %1594 = vmatpush1.msk.msra.mxu1 %vm414_vm15, %v563_v8 }
 0x192   : > { %1451 = vmatmul.mubr.msk.f32.vlgmr.msra.gmra.mrb[0].mxu1 %vm595_vm7, %v570_v13 }
 0x193   : > { %1121 = vmatprep.mubr.f32.mxu1 %v1698_v0 }
 0x196   : > { %v593_v15 = vpop.permute.xlu1 %592 }
 0x265   : > { %v665_v16 = vpop.f32.mrb[0].mxu1 }
 0x266   : > { %v666_v17 = vadd.f32 %v665_v16, %v593_v15  ;;  %v667_v18 = vpop.f32.mrb[1].mxu1 }
 0x267   : > { %v668_v20 = vadd.f32 %v667_v18, %v593_v15  ;;  %v798_v18 = vld [vmem:[%s2255_s5] sm:$0xff] }
 0x268   : > { %vm670_vm8 = vcmp.gt.f32.partialorder %v666_v17, 0.0  ;;  %v672_v22 = vmul.f32 0.1, %v666_v17 }
 0x269   : > { %vm671_vm4 = vcmp.gt.f32.partialorder %v668_v20, 0.0  ;;  %v673_v23 = vmul.f32 0.1, %v668_v20 }
 0x26a   : > { %v1949_v24 = vsel %vm670_vm8, %v666_v17, %v672_v22  ;;  %vm2278_vm8 = vcmask 1047560  }
 0x26b   : > { %v1951_v25 = vsel %vm671_vm4, %v668_v20, %v673_v23  ;;  %682 = vrot.lane.b32.xlu0 %v1949_v24, %s1701_s23  ;;  %vm2277_vm4 = vcmask 121856  }
 0x26c   : > { %684 = vrot.lane.b32.xlu1 %v1951_v25, %s1701_s23 }
 0x26f   : > { %697 = vrot.lane.b32.xlu0 %v1949_v24, %s1700_s22 }
 0x270   : > { %699 = vrot.lane.b32.xlu1 %v1951_v25, %s1700_s22 }
 0x273   : > { %710 = vrot.lane.b32.xlu0 %v1949_v24, %s1702_s29 }
 0x274   : > { %712 = vrot.lane.b32.xlu1 %v1951_v25, %s1702_s29 }
 0x277   : > { %725 = vrot.lane.b32.xlu0 %v1949_v24, %s1703_s8 }
 0x278   : > { %727 = vrot.lane.b32.xlu1 %v1951_v25, %s1703_s8 }
 0x27b   : > { %744 = vrot.lane.b32.xlu0 %v1949_v24, %s1704_s9 }
 0x27c   : > { %746 = vrot.lane.b32.xlu1 %v1951_v25, %s1704_s9 }
 0x27f   : > { %759 = vrot.lane.b32.xlu0 %v1949_v24, %s1705_s13 }
 0x280   : > { %761 = vrot.lane.b32.xlu1 %v1951_v25, %s1705_s13 }
 0x283   : > { %774 = vrot.lane.b32.xlu0 %v1949_v24, %s1706_s14 }
 0x284   : > { %776 = vrot.lane.b32.xlu1 %v1951_v25, %s1706_s14 }
 0x287   : > { %787 = vrot.lane.b32.xlu0 %v1949_v24, %s1707_s15 }
 0x288   : > { %789 = vrot.lane.b32.xlu1 %v1951_v25, %s1707_s15 }
 0x28b   : > { %820 = vperm.xlu0 %1579, %v817_v27  }
 0x2dd   : > { %v683_v28 = vpop.permute.xlu0 %682 }
 0x2de   : > { %v689_v29 = vsel %vm404_vm13, %v683_v28, 0.0  ;;  %v685_v31 = vpop.permute.xlu1 %684 }
 0x2df   : > { %691 = vst.msk [vmem:[#allocation2] sm:$0xff] %vm451_vm14, %v689_v29  ;;  %v686_v32 = vsel %vm418_vm3, %v683_v28, %v685_v31 }
 0x2e1   : > { %v698_v33 = vpop.permute.xlu0 %697 }
 0x2e2   : > { %704 = vst.msk [vmem:[#allocation2 + $0x10] sm:$0xff] %vm465_vm12, %v698_v33  ;;  %v700_v34 = vpop.permute.xlu1 %699 }
 0x2e3   : > { %v701_v35 = vsel %vm2265_vm2, %v698_v33, %v700_v34  ;;  %vm2279_vm2 = vcmask 7168  }
 0x2e4   : > { %v1596_v39 = vpack.c.bf16 %v701_v35, %v686_v32 }
 0x2e5   : > { %v711_v36 = vpop.permute.xlu0 %710 }
 0x2e6   : > { %v717_v37 = vsel %vm414_vm15, %v711_v36, 0.0  ;;  %v713_v38 = vpop.permute.xlu1 %712  ;;  %1597 = vmatprep.subr.msk.bf16.mxu0 %vm1891_vm9, %v1596_v39  ;;  %v799_v42 = vld [vmem:[#allocation2] sm:$0xff] }
 0x2e7   : > { %719 = vst.msk [vmem:[#allocation2 + $0x20] sm:$0xff] %vm2266_vm0, %v717_v37  ;;  %v714_v40 = vsel %vm2277_vm4, %v711_v36, %v713_v38  ;;  %vm2280_vm4 = vcmask 1039360  }
 0x2e8   : > { %vm2281_vm0 = vmmov %vm2280_vm4 }
 0x2e9   : > { %v726_v41 = vpop.permute.xlu0 %725  ;;  %v801_v44 = vld [vmem:[#allocation2 + $0x10] sm:$0xff] }
 0x2ea   : > { %v732_v45 = vsel %vm404_vm13, %v726_v41, 0.0  ;;  %v728_v46 = vpop.permute.xlu1 %727  ;;  %v1484_v47 = vpack.c.bf16 %v801_v44, %v799_v42 }
 0x2eb   : > { %734 = vst.msk [vmem:[#allocation2 + $0x30] sm:$0xff] %vm2278_vm8, %v732_v45  ;;  %v729_v49 = vsel %vm2279_vm2, %v726_v41, %v728_v46  ;;  %vm2282_vm2 = vcmp.ge.s32.totalorder %v1873_v26, 0  ;;  %vm2283_vm8 = vcmask 916480  }
 0x2ec   : > { %1485 = vmatpush1.bf16.msra.mxu0 %v1484_v47  ;;  %v1599_v53 = vpack.c.bf16 %v729_v49, %v714_v40 }
 0x2ed   : > { %v745_v50 = vpop.permute.xlu0 %744 }
 0x2ee   : > { %v747_v51 = vpop.permute.xlu1 %746  ;;  %1600 = vmatprep.subr.msk.bf16.mxu0 %vm1904_vm11, %v1599_v53  ;;  %v803_v55 = vld [vmem:[#allocation2 + $0x20] sm:$0xff] }
 0x2ef   : > { %v752_v52 = vsel %vm415_vm6, %v747_v51, 0.0  ;;  %v748_v57 = vsel %vm2281_vm0, %v745_v50, %v747_v51  ;;  %vm2284_vm0 = vcmask 908288  }
 0x2f0   : > { %754 = vst.msk [vmem:[#allocation2 + $0x58] sm:$0xff] %vm2280_vm4, %v752_v52  ;;  %v1602_v5 = vpack.c.bf16 %v748_v57, %v1949_v24  ;;  %vm2285_vm4 = vmmov %vm2283_vm8 }
 0x2f1   : > { %v760_v58 = vpop.permute.xlu0 %759 }
 0x2f2   : > { %v762_v54 = vpop.permute.xlu1 %761  ;;  %v805_v56 = vld [vmem:[#allocation2 + $0x30] sm:$0xff] }
 0x2f3   : > { %v767_v59 = vsel %vm2282_vm2, %v762_v54, 0.0  ;;  %v1488_v60 = vpack.c.bf16 %v805_v56, %v803_v55  ;;  %v763_v6 = vsel %vm532_vm5, %v760_v58, %v762_v54  ;;  %vm2286_vm2 = vmmov %vm2284_vm0 }
 0x2f4   : > { %769 = vst.msk [vmem:[#allocation2 + $0x68] sm:$0xff] %vm532_vm5, %v767_v59 }
 0x2f5   : > { %1489 = vmatpush1.bf16.msra.mxu0 %v1488_v60  ;;  %v775_v2 = vpop.permute.xlu0 %774 }
 0x2f6   : > { %v777_v61 = vpop.permute.xlu1 %776 }
 0x2f7   : > { %782 = vst.msk [vmem:[#allocation2 + $0x78] sm:$0xff] %vm2283_vm8, %v777_v61  ;;  %v810_v62 = vld [vmem:[#allocation2 + $0x58] sm:$0xff]  ;;  %v778_v7 = vsel %vm2285_vm4, %v775_v2, %v777_v61  ;;  %vm2287_vm4 = vcmask 130048  }
 0x2f8   : > { %v1490_v1 = vpack.c.bf16 %v810_v62, %v1951_v25  ;;  %v1605_v16 = vpack.c.bf16 %v778_v7, %v763_v6 }
 0x2f9   : > { %v788_v11 = vpop.permute.xlu0 %787 }
 0x2fa   : > { %v790_v3 = vpop.permute.xlu1 %789  ;;  %1491 = vmatprep.subr.bf16.mxu0 %v1490_v1 }
 0x2fb   : > { %v795_v4 = vsel %vm415_vm6, %v790_v3, 0.0  ;;  %1603 = vmatpush1.bf16.msk.msra.mxu0 %vm1922_vm1, %v1602_v5  ;;  %v812_v8 = vld [vmem:[#allocation2 + $0x68] sm:$0xff]  ;;  %v791_v15 = vsel %vm2286_vm2, %v788_v11, %v790_v3  ;;  %vm2288_vm2 = vcmask 1047672  }
 0x2fc   : > { %797 = vst.msk [vmem:[#allocation2 + $0x88] sm:$0xff] %vm2284_vm0, %v795_v4 }
 0x2fe   : > { %v814_v10 = vld [vmem:[#allocation2 + $0x78] sm:$0xff] }
 0x2ff   : > { %v1494_v13 = vpack.c.bf16 %v814_v10, %v812_v8 }
 0x301   : > { %1495 = vmatprep.subr.bf16.mxu0 %v1494_v13 }
 0x302   : > { %1606 = vmatpush1.bf16.msk.msra.mxu0 %vm1936_vm10, %v1605_v16 }
 0x303   : > { %v816_v17 = vld [vmem:[#allocation2 + $0x88] sm:$0xff] }
 0x304   : > { %842 = vmatprep.subr.mxu0 %v816_v17 }
 0x306   : > { %1607 = vmatpush1.msk.msra.mxu0 %vm414_vm15, %v791_v15 }
 0x307   : > { %1452 = vmatmul.mubr.msk.f32.vlgmr.msra.gmra.mrb[2].mxu0 %vm595_vm7, %v798_v18 }
 0x308   : > { %1350 = vmatprep.mubr.f32.mxu0 %v1698_v0  ;;  %v1454_v0 = vld [vmem:[%s2254_s4 + $0x8] sm:$0xff] }
 0x30a   : > { %v821_v20 = vpop.permute.xlu0 %820 }
 0x3da   : > { %v892_v22 = vpop.f32.mrb[2].mxu0 }
 0x3db   : > { %v893_v23 = vadd.f32 %v892_v22, %v821_v20  ;;  %v894_v24 = vpop.f32.mrb[3].mxu0 }
 0x3dc   : > { %v895_v25 = vadd.f32 %v894_v24, %v821_v20 }
 0x3dd   : > { %v897_v27 = vadd.f32 %v893_v23, %v1820_v12  ;;  %v1453_v23 = vld [vmem:[%s2253_s3 + $0x8] sm:$0xff] }
 0x3de   : > { %v898_v28 = vadd.f32 %v895_v25, %v1826_v14 }
 0x3df   : > { %vm899_vm8 = vcmp.gt.f32.partialorder %v897_v27, 0.0  ;;  %v901_v29 = vmul.f32 0.1, %v897_v27 }
 0x3e0   : > { %vm900_vm0 = vcmp.gt.f32.partialorder %v898_v28, 0.0  ;;  %v902_v31 = vmul.f32 0.1, %v898_v28 }
 0x3e1   : > { %v2035_v32 = vsel %vm899_vm8, %v897_v27, %v901_v29  ;;  %vm2289_vm8 = vcmask 121856  }
 0x3e2   : > { %v2037_v33 = vsel %vm900_vm0, %v898_v28, %v902_v31  ;;  %911 = vrot.lane.b32.xlu1 %v2035_v32, %s1701_s23  ;;  %vm2290_vm0 = vcmask 1047560  }
 0x3e3   : > { %913 = vrot.lane.b32.xlu0 %v2037_v33, %s1701_s23 }
 0x3e6   : > { %926 = vrot.lane.b32.xlu1 %v2035_v32, %s1700_s22 }
 0x3e7   : > { %928 = vrot.lane.b32.xlu0 %v2037_v33, %s1700_s22 }
 0x3ea   : > { %939 = vrot.lane.b32.xlu1 %v2035_v32, %s1702_s29 }
 0x3eb   : > { %941 = vrot.lane.b32.xlu0 %v2037_v33, %s1702_s29 }
 0x3ee   : > { %954 = vrot.lane.b32.xlu1 %v2035_v32, %s1703_s8 }
 0x3ef   : > { %956 = vrot.lane.b32.xlu0 %v2037_v33, %s1703_s8 }
 0x3f2   : > { %973 = vrot.lane.b32.xlu1 %v2035_v32, %s1704_s9 }
 0x3f3   : > { %975 = vrot.lane.b32.xlu0 %v2037_v33, %s1704_s9 }
 0x3f6   : > { %988 = vrot.lane.b32.xlu1 %v2035_v32, %s1705_s13 }
 0x3f7   : > { %990 = vrot.lane.b32.xlu0 %v2037_v33, %s1705_s13 }
 0x3fa   : > { %1003 = vrot.lane.b32.xlu1 %v2035_v32, %s1706_s14 }
 0x3fb   : > { %1005 = vrot.lane.b32.xlu0 %v2037_v33, %s1706_s14 }
 0x3fe   : > { %1016 = vrot.lane.b32.xlu1 %v2035_v32, %s1707_s15 }
 0x3ff   : > { %1018 = vrot.lane.b32.xlu0 %v2037_v33, %s1707_s15 }
 0x402   : > { %1051 = vperm.xlu1 %1580, %v1454_v0  }
 0x454   : > { %v912_v12 = vpop.permute.xlu1 %911 }
 0x455   : > { %v918_v14 = vsel %vm404_vm13, %v912_v12, 0.0  ;;  %v914_v34 = vpop.permute.xlu0 %913 }
 0x456   : > { %920 = vst.msk [vmem:[#allocation2] sm:$0xff] %vm451_vm14, %v918_v14  ;;  %v915_v35 = vsel %vm418_vm3, %v912_v12, %v914_v34  ;;  %v1457_v34 = vld [vmem:[%s2256_s6 + $0x8] sm:$0xff] }
 0x458   : > { %v927_v36 = vpop.permute.xlu1 %926 }
 0x459   : > { %933 = vst.msk [vmem:[#allocation2 + $0x10] sm:$0xff] %vm465_vm12, %v927_v36  ;;  %v929_v37 = vpop.permute.xlu0 %928 }
 0x45a   : > { %v930_v38 = vsel %vm2287_vm4, %v927_v36, %v929_v37  ;;  %vm2291_vm4 = vcmask 7168  }
 0x45b   : > { %v1609_v42 = vpack.c.bf16 %v930_v38, %v915_v35 }
 0x45c   : > { %v940_v39 = vpop.permute.xlu1 %939 }
 0x45d   : > { %v946_v40 = vsel %vm414_vm15, %v940_v39, 0.0  ;;  %v942_v41 = vpop.permute.xlu0 %941  ;;  %1610 = vmatprep.subr.msk.bf16.mxu1 %vm1891_vm9, %v1609_v42  ;;  %v1029_v46 = vld [vmem:[#allocation2] sm:$0xff] }
 0x45e   : > { %948 = vst.msk [vmem:[#allocation2 + $0x20] sm:$0xff] %vm2288_vm2, %v946_v40  ;;  %v943_v44 = vsel %vm2289_vm8, %v940_v39, %v942_v41  ;;  %vm2292_vm2 = vcmask 1039360  }
 0x45f   : > { %vm2293_vm8 = vmmov %vm2292_vm2 }
 0x460   : > { %v955_v45 = vpop.permute.xlu1 %954  ;;  %v1031_v47 = vld [vmem:[#allocation2 + $0x10] sm:$0xff] }
 0x461   : > { %v961_v49 = vsel %vm404_vm13, %v955_v45, 0.0  ;;  %v957_v50 = vpop.permute.xlu0 %956  ;;  %v1500_v51 = vpack.c.bf16 %v1031_v47, %v1029_v46 }
 0x462   : > { %963 = vst.msk [vmem:[#allocation2 + $0x30] sm:$0xff] %vm2290_vm0, %v961_v49  ;;  %v958_v52 = vsel %vm2291_vm4, %v955_v45, %v957_v50  ;;  %vm2294_vm0 = vcmp.ge.s32.totalorder %v1873_v26, 0  ;;  %vm2295_vm4 = vcmask 916480  }
 0x463   : > { %1501 = vmatpush1.bf16.msra.mxu1 %v1500_v51  ;;  %v1612_v56 = vpack.c.bf16 %v958_v52, %v943_v44 }
 0x464   : > { %v974_v53 = vpop.permute.xlu1 %973 }
 0x465   : > { %v976_v54 = vpop.permute.xlu0 %975  ;;  %1613 = vmatprep.subr.msk.bf16.mxu1 %vm1904_vm11, %v1612_v56  ;;  %v1033_v58 = vld [vmem:[#allocation2 + $0x20] sm:$0xff] }
 0x466   : > { %v981_v55 = vsel %vm415_vm6, %v976_v54, 0.0  ;;  %v977_v60 = vsel %vm2293_vm8, %v974_v53, %v976_v54  ;;  %vm2297_vm8 = vmmov %vm2295_vm4 }
 0x467   : > { %983 = vst.msk [vmem:[#allocation2 + $0x58] sm:$0xff] %vm2292_vm2, %v981_v55  ;;  %v1615_v8 = vpack.c.bf16 %v977_v60, %v2035_v32  ;;  %vm2296_vm2 = vcmask 908288  }
 0x468   : > { %v989_v61 = vpop.permute.xlu1 %988 }
 0x469   : > { %v991_v57 = vpop.permute.xlu0 %990  ;;  %v1035_v59 = vld [vmem:[#allocation2 + $0x30] sm:$0xff] }
 0x46a   : > { %v996_v62 = vsel %vm2294_vm0, %v991_v57, 0.0  ;;  %v1504_v1 = vpack.c.bf16 %v1035_v59, %v1033_v58  ;;  %v992_v10 = vsel %vm532_vm5, %v989_v61, %v991_v57  ;;  %vm2298_vm0 = vmmov %vm2296_vm2 }
 0x46b   : > { %998 = vst.msk [vmem:[#allocation2 + $0x68] sm:$0xff] %vm532_vm5, %v996_v62 }
 0x46c   : > { %1505 = vmatpush1.bf16.msra.mxu1 %v1504_v1  ;;  %v1004_v5 = vpop.permute.xlu1 %1003 }
 0x46d   : > { %v1006_v2 = vpop.permute.xlu0 %1005 }
 0x46e   : > { %1011 = vst.msk [vmem:[#allocation2 + $0x78] sm:$0xff] %vm2295_vm4, %v1006_v2  ;;  %v1040_v3 = vld [vmem:[#allocation2 + $0x58] sm:$0xff]  ;;  %v1007_v11 = vsel %vm2297_vm8, %v1004_v5, %v1006_v2  ;;  %vm2299_vm8 = vcmask 130048  }
 0x46f   : > { %v1506_v4 = vpack.c.bf16 %v1040_v3, %v2037_v33  ;;  %v1618_v20 = vpack.c.bf16 %v1007_v11, %v992_v10 }
 0x470   : > { %v1017_v16 = vpop.permute.xlu1 %1016 }
 0x471   : > { %v1019_v6 = vpop.permute.xlu0 %1018  ;;  %1507 = vmatprep.subr.bf16.mxu1 %v1506_v4 }
 0x472   : > { %v1024_v7 = vsel %vm415_vm6, %v1019_v6, 0.0  ;;  %1616 = vmatpush1.bf16.msk.msra.mxu1 %vm1922_vm1, %v1615_v8  ;;  %v1042_v13 = vld [vmem:[#allocation2 + $0x68] sm:$0xff]  ;;  %v1020_v18 = vsel %vm2298_vm0, %v1017_v16, %v1019_v6  ;;  %vm2300_vm0 = vcmask 1047672  }
 0x473   : > { %1026 = vst.msk [vmem:[#allocation2 + $0x88] sm:$0xff] %vm2296_vm2, %v1024_v7 }
 0x475   : > { %v1044_v15 = vld [vmem:[#allocation2 + $0x78] sm:$0xff] }
 0x476   : > { %v1510_v17 = vpack.c.bf16 %v1044_v15, %v1042_v13 }
 0x478   : > { %1511 = vmatprep.subr.bf16.mxu1 %v1510_v17 }
 0x479   : > { %1619 = vmatpush1.bf16.msk.msra.mxu1 %vm1936_vm10, %v1618_v20 }
 0x47a   : > { %v1046_v22 = vld [vmem:[#allocation2 + $0x88] sm:$0xff] }
 0x47b   : > { %1073 = vmatprep.subr.mxu1 %v1046_v22 }
 0x47d   : > { %1620 = vmatpush1.msk.msra.mxu1 %vm414_vm15, %v1020_v18 }
 0x47e   : > { %1455 = vmatmul.mubr.msk.f32.vlgmr.msra.gmra.mrb[2].mxu1 %vm595_vm7, %v1453_v23 }
 0x481   : > { %v1052_v24 = vpop.permute.xlu1 %1051 }
 0x551   : > { %v1123_v25 = vpop.f32.mrb[2].mxu1 }
 0x552   : > { %v1124_v27 = vadd.f32 %v1123_v25, %v1052_v24  ;;  %v1125_v28 = vpop.f32.mrb[3].mxu1 }
 0x553   : > { %v1126_v29 = vadd.f32 %v1125_v28, %v1052_v24 }
 0x554   : > { %vm1128_vm4 = vcmp.gt.f32.partialorder %v1124_v27, 0.0  ;;  %v1130_v31 = vmul.f32 0.1, %v1124_v27 }
 0x555   : > { %vm1129_vm2 = vcmp.gt.f32.partialorder %v1126_v29, 0.0  ;;  %v1131_v0 = vmul.f32 0.1, %v1126_v29 }
 0x556   : > { %v2118_v12 = vsel %vm1128_vm4, %v1124_v27, %v1130_v31 }
 0x557   : > { %v2120_v14 = vsel %vm1129_vm2, %v1126_v29, %v1131_v0  ;;  %1140 = vrot.lane.b32.xlu0 %v2118_v12, %s1701_s23  ;;  %vm2307_vm2 = vcmask 916480  }
 0x558   : > { %1142 = vrot.lane.b32.xlu1 %v2120_v14, %s1701_s23 }
 0x55b   : > { %1155 = vrot.lane.b32.xlu0 %v2118_v12, %s1700_s22 }
 0x55c   : > { %1157 = vrot.lane.b32.xlu1 %v2120_v14, %s1700_s22  ;;  %s1638_s22 = sshll.u32 %s1709_s21, 4  ;;  %s1639_s22 = int_to_ptr.vmem [resolvable:$false] %s1638_s22 }
 0x55d   : > { %s1640_s23 = scalar_lea.vmem %s1639_s22, 512 }
 0x55f   : > { %1168 = vrot.lane.b32.xlu0 %v2118_v12, %s1702_s29 }
 0x560   : > { %1170 = vrot.lane.b32.xlu1 %v2120_v14, %s1702_s29 }
 0x563   : > { %1183 = vrot.lane.b32.xlu0 %v2118_v12, %s1703_s8 }
 0x564   : > { %1185 = vrot.lane.b32.xlu1 %v2120_v14, %s1703_s8 }
 0x567   : > { %1202 = vrot.lane.b32.xlu0 %v2118_v12, %s1704_s9 }
 0x568   : > { %1204 = vrot.lane.b32.xlu1 %v2120_v14, %s1704_s9  ;;  %s269_s9 = sand.u32 1, %s1688_s25  }
 0x56b   : > { %1217 = vrot.lane.b32.xlu0 %v2118_v12, %s1705_s13 }
 0x56c   : > { %1219 = vrot.lane.b32.xlu1 %v2120_v14, %s1705_s13  ;;  %s1445_s13 = sshll.u32 %s269_s9, 4 }
 0x56f   : > { %1232 = vrot.lane.b32.xlu0 %v2118_v12, %s1706_s14 }
 0x570   : > { %1234 = vrot.lane.b32.xlu1 %v2120_v14, %s1706_s14  ;;  %s1465_s14 = sshll.u32 %s1771_s28, 8  ;;  %s1368_s28 = scalar_lea.sflag [#allocation5], %s269_s9 }
 0x571   : > { %s2208_s19 = scalar_lea.hbm %s2257_s7, %s1465_s14 }
 0x573   : > { %1245 = vrot.lane.b32.xlu0 %v2118_v12, %s1707_s15 }
 0x574   : > { %1247 = vrot.lane.b32.xlu1 %v2120_v14, %s1707_s15  ;;  %s271_s15 = scalar_lea.vmem [#allocation4], %s1445_s13 }
 0x575   : > { %s1382_s16 = sshll.u32 %s271_s15, 4  ;;  %s2210_s16 = int_to_ptr.vmem [resolvable:$true] %s1382_s16 }
 0x576   : > { %s1634_s20 = scalar_lea.vmem %s2210_s16, 256  ;;  %p1641_p0 = scmp.lt.s32.totalorder %s2210_s16, %s1639_s22 }
 0x577   : > { %1280 = vperm.xlu0 %1579, %v1457_v34   ;;  %p1635_p11 = scmp.ne.s32.totalorder %s2210_s16, %s1634_s20  ;;  %p1642_p1 = scmp.lt.s32.totalorder %s1640_s23, %s1634_s20 }
 0x579   : > { %p1636_p12 = pnand %p1635_p11, %p1788_p5  ;;  %p1643_p2 = por %p1642_p1, %p1641_p0 }
 0x57b   : > { %p1637_p13 = pneg %p1636_p12 }
 0x57d   : > { %p1644_p3 = pnand %p1643_p2, %p1637_p13 }
 0x5c9   : > { %v1141_v35 = vpop.permute.xlu0 %1140 }
 0x5ca   : > { %v1147_v36 = vsel %vm404_vm13, %v1141_v35, 0.0  ;;  %v1143_v37 = vpop.permute.xlu1 %1142 }
 0x5cb   : > { %1149 = vst.msk [vmem:[#allocation2] sm:$0xff] %vm451_vm14, %v1147_v36  ;;  %v1144_v38 = vsel %vm418_vm3, %v1141_v35, %v1143_v37  ;;  %vm2301_vm14 = vcmask 121856   ;;  %vm2302_vm3 = vcmask 1047560  }
 0x5cd   : > { %v1156_v39 = vpop.permute.xlu0 %1155 }
 0x5ce   : > { %1162 = vst.msk [vmem:[#allocation2 + $0x10] sm:$0xff] %vm465_vm12, %v1156_v39  ;;  %v1158_v40 = vpop.permute.xlu1 %1157  ;;  %vm2303_vm12 = vcmask 7168  }
 0x5cf   : > { %v1159_v41 = vsel %vm2299_vm8, %v1156_v39, %v1158_v40  ;;  %vm2309_vm8 = vcmask 908288  }
 0x5d0   : > { %v1622_v46 = vpack.c.bf16 %v1159_v41, %v1144_v38 }
 0x5d1   : > { %v1169_v42 = vpop.permute.xlu0 %1168 }
 0x5d2   : > { %v1175_v44 = vsel %vm414_vm15, %v1169_v42, 0.0  ;;  %v1171_v45 = vpop.permute.xlu1 %1170  ;;  %1623 = vmatprep.subr.msk.bf16.mxu0 %vm1891_vm9, %v1622_v46  ;;  %v1258_v50 = vld [vmem:[#allocation2] sm:$0xff]  ;;  %vm2304_vm9 = vcmask 1039360  }
 0x5d3   : > { %1177 = vst.msk [vmem:[#allocation2 + $0x20] sm:$0xff] %vm2300_vm0, %v1175_v44  ;;  %v1172_v47 = vsel %vm2301_vm14, %v1169_v42, %v1171_v45  ;;  %vm2305_vm4 = vmmov %vm2304_vm9 }
 0x5d5   : > { %v1184_v49 = vpop.permute.xlu0 %1183  ;;  %v1260_v51 = vld [vmem:[#allocation2 + $0x10] sm:$0xff] }
 0x5d6   : > { %v1190_v52 = vsel %vm404_vm13, %v1184_v49, 0.0  ;;  %v1186_v53 = vpop.permute.xlu1 %1185  ;;  %v1516_v54 = vpack.c.bf16 %v1260_v51, %v1258_v50  ;;  %vm2306_vm13 = vcmp.ge.s32.totalorder %v1873_v26, 0 }
 0x5d7   : > { %1192 = vst.msk [vmem:[#allocation2 + $0x30] sm:$0xff] %vm2302_vm3, %v1190_v52  ;;  %v1187_v55 = vsel %vm2303_vm12, %v1184_v49, %v1186_v53 }
 0x5d8   : > { %1517 = vmatpush1.bf16.msra.mxu0 %v1516_v54  ;;  %v1625_v59 = vpack.c.bf16 %v1187_v55, %v1172_v47 }
 0x5d9   : > { %v1203_v56 = vpop.permute.xlu0 %1202 }
 0x5da   : > { %v1205_v43 = vpop.permute.xlu1 %1204  ;;  %1626 = vmatprep.subr.msk.bf16.mxu0 %vm1904_vm11, %v1625_v59  ;;  %v1262_v61 = vld [vmem:[#allocation2 + $0x20] sm:$0xff]  ;;  %vm2308_vm11 = vmmov %vm2307_vm2 }
 0x5db   : > { %v1206_v57 = vsel %vm2304_vm9, %v1203_v56, %v1205_v43  ;;  %v1210_v58 = vsel %vm415_vm6, %v1205_v43, 0.0 }
 0x5dc   : > { %1212 = vst.msk [vmem:[#allocation2 + $0x58] sm:$0xff] %vm2305_vm4, %v1210_v58  ;;  %v1628_v13 = vpack.c.bf16 %v1206_v57, %v2118_v12 }
 0x5dd   : > { %v1218_v19 = vpop.permute.xlu0 %1217 }
 0x5de   : > { %v1220_v60 = vpop.permute.xlu1 %1219  ;;  %v1264_v62 = vld [vmem:[#allocation2 + $0x30] sm:$0xff] }
 0x5df   : > { %v1221_v1 = vsel %vm532_vm5, %v1218_v19, %v1220_v60  ;;  %v1225_v2 = vsel %vm2306_vm13, %v1220_v60, 0.0  ;;  %v1520_v3 = vpack.c.bf16 %v1264_v62, %v1262_v61 }
 0x5e0   : > { %1227 = vst.msk [vmem:[#allocation2 + $0x68] sm:$0xff] %vm532_vm5, %v1225_v2  ;;  %vm2310_vm5 = vmmov %vm2309_vm8 }
 0x5e1   : > { %v1233_v4 = vpop.permute.xlu0 %1232  ;;  %1521 = vmatpush1.bf16.msra.mxu0 %v1520_v3 }
 0x5e2   : > { %v1235_v5 = vpop.permute.xlu1 %1234 }
 0x5e3   : > { %v1236_v48 = vsel %vm2307_vm2, %v1233_v4, %v1235_v5  ;;  %1240 = vst.msk [vmem:[#allocation2 + $0x78] sm:$0xff] %vm2308_vm11, %v1235_v5  ;;  %v1269_v6 = vld [vmem:[#allocation2 + $0x58] sm:$0xff] }
 0x5e4   : > { %v1522_v7 = vpack.c.bf16 %v1269_v6, %v2120_v14  ;;  %v1631_v18 = vpack.c.bf16 %v1236_v48, %v1221_v1 }
 0x5e5   : > { %v1246_v8 = vpop.permute.xlu0 %1245 }
 0x5e6   : > { %v1248_v10 = vpop.permute.xlu1 %1247  ;;  %1523 = vmatprep.subr.bf16.mxu0 %v1522_v7 }
 0x5e7   : > { %v1249_v11 = vsel %vm2309_vm8, %v1246_v8, %v1248_v10  ;;  %v1253_v26 = vsel %vm415_vm6, %v1248_v10, 0.0  ;;  %1629 = vmatpush1.bf16.msk.msra.mxu0 %vm1922_vm1, %v1628_v13  ;;  %v1271_v15 = vld [vmem:[#allocation2 + $0x68] sm:$0xff] }
 0x5e8   : > { %1255 = vst.msk [vmem:[#allocation2 + $0x88] sm:$0xff] %vm2310_vm5, %v1253_v26 }
 0x5ea   : > { %v1273_v16 = vld [vmem:[#allocation2 + $0x78] sm:$0xff] }
 0x5eb   : > { %v1526_v17 = vpack.c.bf16 %v1273_v16, %v1271_v15 }
 0x5ed   : > { %1527 = vmatprep.subr.bf16.mxu0 %v1526_v17 }
 0x5ee   : > { %1632 = vmatpush1.bf16.msk.msra.mxu0 %vm1936_vm10, %v1631_v18 }
 0x5ef   : > { %v1275_v20 = vld [vmem:[#allocation2 + $0x88] sm:$0xff] }
 0x5f0   : > { %1302 = vmatprep.subr.mxu0 %v1275_v20 }
 0x5f2   : > { %1633 = vmatpush1.msk.msra.mxu0 %vm414_vm15, %v1249_v11 }
 0x5f3   : > { %1458 = vmatmul.mubr.msk.f32.vlgmr.msra.gmra.mrb[4].mxu0 %vm595_vm7, %v1456_v30 }
 0x5f6   : > { %v1281_v63 = vpop.permute.xlu0 %1280 }
 0x6c6   : > { %v1352_v22 = vpop.f32.mrb[4].mxu0 }
 0x6c7   : > { %v1353_v23 = vadd.f32 %v1352_v22, %v1281_v63  ;;  %v1354_v24 = vpop.f32.mrb[5].mxu0 }
 0x6c8   : > { %v1355_v9 = vadd.f32 %v1354_v24, %v1281_v63 }
 0x6c9   : > { %v1357_v25 = vadd.f32 %v1353_v23, %v2035_v32 }
 0x6ca   : > { %v1358_v27 = vadd.f32 %v1355_v9, %v2037_v33 }
 0x6cb   : > { %vm1359_vm1 = vcmp.gt.f32.partialorder %v1357_v25, 0.0  ;;  %v1361_v21 = vmul.f32 0.1, %v1357_v25 }
 0x6cc   : > { %vm1360_vm15 = vcmp.gt.f32.partialorder %v1358_v27, 0.0  ;;  %v1362_v28 = vmul.f32 0.1, %v1358_v27 }
 0x6cd   : > { %v1363_v29 = vsel %vm1359_vm1, %v1357_v25, %v1361_v21 }
 0x6ce   : > { %1365 = vst [vmem:[%s271_s15] sm:$0xff] %v1363_v29  ;;  %v1364_v32 = vsel %vm1360_vm15, %v1358_v27, %v1362_v28 }
 0x6cf   : > { %1366 = vst [vmem:[%s271_s15 + $0x8] sm:$0xff] %v1364_v32 }
 0x6d0   : > { %1647 = shalt.err (!%p1644_p3)
}
 0x6d1   : > { %s1648_s29 = scalar_lea.hbm %s2208_s19, 256  ;;  %s1652_s13 = scalar_lea.hbm %s2257_s7, 512 }
 0x6d2   : > { %p1649_p4 = scmp.ne.s32.totalorder %s2208_s19, %s1648_s29  ;;  %p1653_p9 = scmp.lt.u32.totalorder %s2208_s19, %s2257_s7 }
 0x6d3   : > { %p1654_p10 = scmp.lt.u32.totalorder %s1652_s13, %s1648_s29  ;;  %p1656_p12 = scmp.lt.u32.totalorder %s1648_s29, %s2208_s19 }
 0x6d4   : > { %p1650_p7 = pnand %p1649_p4, %p1788_p5 }
 0x6d5   : > { %p1655_p11 = por %p1654_p10, %p1653_p9 }
 0x6d6   : > { %p1651_p8 = pneg %p1650_p7 }
 0x6d7   : > { %p1657_p13 = por %p1656_p12, %p1655_p11 }
 0x6d9   : > { %p1658_p0 = pnand %p1657_p13, %p1651_p8 }
 0x6db   : > { %1661 = shalt.err (!%p1658_p0)
}
 0x6dc   : > { %1530 = dma.vmem_to_hbm [thread:$0]  (%p1788_p5), %s2210_s16, 256, %s2208_s19, %s1368_s28  }
 0x6dd PF: > { %p1536_p1 = scmp.ge.s32.totalorder %s1696_s27, 2  ;;  %s1394_s17 = sand.u32 1, %s1684_s24  }
 0x6de   : > { %s1395_s18 = scalar_lea.sflag [#allocation5], %s1394_s17 }
 0x6df   : > { %p1533_p2 = pnand %p1536_p1, %p1792_p6 }
 0x6e1   : > { %1679 = dma.done.wait (!%p1533_p2), %s1395_s18, 256  }
 0x6e2   : > { %1681 = vsyncadd (!%p1533_p2), %s1395_s18, 4294967040  ;;  %p17_p3 = scmp.ge.s32.totalorder %s1775_s30, 4   ;;  %s2311_s24 = smov %s1688_s25 }
 0x6e3   : > { %s2312_s25 = smov %s1692_s26  ;;  %s2313_s26 = smov %s1786_s10 }
 0x6e4   : > { %s2314_s27 = smov %s1775_s30  ;;  %19 = sbr.rel (!%p17_p3) target bundleno = 3 (0x3), region = 87 }
 0x6eb   :  { %1400 = vsyncpa [#allocation5], 1 }
 0x6ec   :  { %1402 = vsyncpa [#allocation5 + $0x1], 1 }

</bundles_post_ra>
